<compile_context>
chip_gen: v5e
topology: v5e:2x2
jax: 0.10.0
libtpu: 0.0.40
codegen_flags: <defaults>
</compile_context>

<pallas_src>
import jax
import jax.numpy as jnp
from jax.experimental import pallas as pl
from jax.experimental.pallas import tpu as pltpu


def _upsample_conv_kernel(x_ref, w_ref, rw_ref, b_ref, o_ref, z_ref):
    # x_ref : (Cin, TD, TH, Win)           VMEM  one (n, d-range, h-tile) input slab
    # w_ref : (Cout, Cin)                  SMEM  1x1x1 conv weight (scalar reads)
    # rw_ref: (Win, sh*Wout)               VMEM  0/1 H+W nearest-neighbour replication matrix
    # b_ref : (Cout,)                      SMEM  bias (scalar reads)
    # o_ref : (Cout, TD, sd, TH, sh*Wout)  VMEM  replica-covering, lane-dense output block
    # z_ref : (Cout, TD, TH, Win) f32      VMEM  scratch holding the conv result
    cout, td, sd, th, sh_wout = o_ref.shape
    cin = x_ref.shape[0]

    x = x_ref[...]                                   # (Cin, TD, TH, Win), loaded once

    # ---- 1x1x1 conv on the VPU: exact f32, Cout*Cin scalar-broadcast FMAs --------------
    for co in range(cout):                           # static, Cout is small
        acc = x[0] * w_ref[co, 0]
        for ci in range(1, cin):
            acc = acc + x[ci] * w_ref[co, ci]
        z_ref[co] = acc + b_ref[co]                  # bias added at width Win (pre-replication)

    # ---- exact nearest-neighbour H/W replication via one 0/1 matmul --------------------
    # Default MXU precision truncates f32 operands to bf16, so split z into bf16 hi/lo
    # parts: rw is 0/1 (exact in bf16) and selects a single term per output, so the
    # hi-pass + lo-pass sum reconstructs z almost exactly at 2 cheap default-precision
    # passes (vs 3-6 passes for Precision.HIGHEST).
    z = z_ref[...].reshape(cout * td * th, -1)       # (Cout*TD*TH, Win): major-dim merge only
    z_hi = z.astype(jnp.bfloat16).astype(jnp.float32)
    z_lo = z - z_hi
    rw = rw_ref[...]                                 # (Win, sh*Wout)
    y = (jnp.dot(z_hi, rw, preferred_element_type=jnp.float32) +
         jnp.dot(z_lo, rw, preferred_element_type=jnp.float32))   # (Cout*TD*TH, sh*Wout)

    # ---- replicate along D (sd) and store once, lane-dense (lane dim = sh*Wout) --------
    y = y.reshape(cout, td, 1, th, sh_wout)
    o_ref[...] = jnp.broadcast_to(y, o_ref.shape).astype(o_ref.dtype)


def upsample_nearest_conv1x1(x_ncdhw, weight, bias, pool_op_kernel_size, *,
                             tile_d=None, tile_h=None):
    """Equivalent of Upsample_Layer_nearest.forward for NCDHW float32 input."""
    # TODO(synk): only mode='nearest' is implemented (other interpolate modes of the
    # original module have no equivalent here).
    sd, sh, sw = pool_op_kernel_size
    N, Cin, Din, Hin, Win = x_ncdhw.shape
    Cout = weight.shape[0]
    Dout, Hout, Wout = Din * sd, Hin * sh, Win * sw

    if tile_d is None:
        tile_d = Din                      # fold the whole D range into each block
    if tile_h is None:
        tile_h = Hin                      # whole H plane per grid step at these sizes
    assert Din % tile_d == 0
    assert Hin % tile_h == 0
    assert tile_h == Hin or tile_h % 8 == 0   # (8,128) rule on the blocks

    wmat = weight.reshape(Cout, Cin).astype(jnp.float32)               # (Cout, Cin)
    bvec = bias.reshape(Cout).astype(jnp.float32)                      # (Cout,)
    # rw[wi, j*Wout + wo] = 1  iff  wi == wo // sw   (H replica j, nearest along W)
    row = (jnp.arange(Win)[:, None] == (jnp.arange(Wout)[None, :] // sw))
    rw = jnp.tile(row, (1, sh)).astype(jnp.float32)                    # (Win, sh*Wout)

    grid = (N, Din // tile_d, Hin // tile_h)   # leading (parallel) axis = N (even here)

    # VMEM budget derived from the actual double-buffered block sizes, with headroom;
    # kept well inside v7x's 64 MiB per-TensorCore VMEM.
    isz = 4
    in_block = Cin * tile_d * tile_h * Win * isz
    out_block = Cout * tile_d * sd * tile_h * sh * Wout * isz
    rw_bytes = Win * sh * Wout * isz
    z_scratch = Cout * tile_d * tile_h * Win * isz
    vmem_needed = 2 * (in_block + out_block + rw_bytes) + z_scratch
    vmem_limit = int(max(16 << 20, min(2 * vmem_needed + (4 << 20), 64 << 20)))

    out6 = pl.pallas_call(
        _upsample_conv_kernel,
        out_shape=jax.ShapeDtypeStruct((N, Cout, Din, sd, Hin, sh * Wout), x_ncdhw.dtype),
        grid_spec=pltpu.PrefetchScalarGridSpec(
            num_scalar_prefetch=0,
            grid=grid,
            in_specs=[
                # input consumed directly in NCDHW -- no wrapper-side transpose
                pl.BlockSpec((None, Cin, tile_d, tile_h, Win),
                             lambda n, d, h: (n, 0, d, h, 0)),
                pl.BlockSpec(memory_space=pltpu.MemorySpace.SMEM),      # conv weight
                pl.BlockSpec((Win, sh * Wout), lambda n, d, h: (0, 0)),  # replication matrix
                pl.BlockSpec(memory_space=pltpu.MemorySpace.SMEM),      # bias
            ],
            # one lane-dense output block covers all sd*sh*sw replicas of the input tile
            out_specs=pl.BlockSpec((None, Cout, tile_d, sd, tile_h, sh * Wout),
                                   lambda n, d, h: (n, 0, d, 0, h, 0)),
            scratch_shapes=[pltpu.VMEM((Cout, tile_d, tile_h, Win), jnp.float32)],
        ),
        compiler_params=pltpu.CompilerParams(
            dimension_semantics=("parallel", "parallel", "parallel"),
            vmem_limit_bytes=vmem_limit),
    )(x_ncdhw, wmat, rw, bvec)

    # (N, Cout, Din, sd, Hin, sh*Wout) has the same memory layout as
    # (N, Cout, Din, sd, Hin, sh, Wout); merging only adjacent axes -> free reshape to
    # NCDHW, no extra HBM pass.
    return out6.reshape(N, Cout, Dout, Hout, Wout)


def reference_forward(x_ncdhw, weight, bias, pool_op_kernel_size):
    """Pure-JAX reference mirroring the PyTorch module (ground truth, f32 HIGHEST)."""
    sd, sh, sw = pool_op_kernel_size
    xu = jnp.repeat(x_ncdhw, sd, axis=2)
    xu = jnp.repeat(xu, sh, axis=3)
    xu = jnp.repeat(xu, sw, axis=4)
    w = weight.reshape(weight.shape[0], weight.shape[1])   # (Cout, Cin)
    y = jnp.einsum('ncdhw,oc->nodhw', xu, w, precision=jax.lax.Precision.HIGHEST)
    return y + bias[None, :, None, None, None]


if __name__ == "__main__":
    # Module config (synthetic, deterministic init -- no checkpoint load).
    input_channels = 4
    output_channels = 8
    pool_op_kernel_size = (2, 2, 2)

    # Small 5D NCDHW input consistent with Conv3d semantics.
    N, D, H, W = 2, 4, 8, 8
    key = jax.random.PRNGKey(0)
    kx, kw, kb = jax.random.split(key, 3)

    x = jax.random.normal(kx, (N, input_channels, D, H, W), dtype=jnp.float32)

    # nn.Conv3d(kernel_size=1): weight (Cout, Cin, 1, 1, 1), bias (Cout,)
    fan_in = input_channels  # * 1 * 1 * 1
    bound = 1.0 / jnp.sqrt(jnp.float32(fan_in))
    weight = jax.random.uniform(kw, (output_channels, input_channels, 1, 1, 1),
                                minval=-bound, maxval=bound, dtype=jnp.float32)
    bias = jax.random.uniform(kb, (output_channels,),
                              minval=-bound, maxval=bound, dtype=jnp.float32)

    out = upsample_nearest_conv1x1(x, weight, bias, pool_op_kernel_size)
    out = jax.block_until_ready(out)

    ref = jax.block_until_ready(reference_forward(x, weight, bias, pool_op_kernel_size))

    assert out.shape == (N, output_channels,
                         D * pool_op_kernel_size[0],
                         H * pool_op_kernel_size[1],
                         W * pool_op_kernel_size[2]), out.shape
    # VPU conv is exact f32 and the hi/lo-split 0/1 replication matmul reconstructs it to
    # ~2^-18 relative error, so a tight tolerance vs the f32-HIGHEST reference holds.
    assert jnp.allclose(out, ref, atol=5e-3, rtol=5e-3), \
        float(jnp.max(jnp.abs(out - ref)))

    print("KERNEL_OK")
</pallas_src>

<mosaic_0001>
module attributes {stable_mosaic.version = 11 : i64} {
  func.func @_upsample_conv_kernel(%arg0: i32, %arg1: i32, %arg2: i32, %arg3: memref<1x4x4x8x8xf32, #tpu.memory_space<vmem>>, %arg4: memref<8x4xf32, #tpu.memory_space<smem>>, %arg5: memref<8x32xf32, #tpu.memory_space<vmem>>, %arg6: memref<8xf32, #tpu.memory_space<smem>>, %arg7: memref<1x8x4x2x8x32xf32, #tpu.memory_space<vmem>>, %arg8: memref<8x4x8x8xf32, #tpu.memory_space<vmem>>) attributes {dimension_semantics = [#tpu.dimension_semantics<parallel>, #tpu.dimension_semantics<parallel>, #tpu.dimension_semantics<parallel>], iteration_bounds = array<i64: 2, 1, 1>, scalar_prefetch = 0 : i64, scratch_operands = 1 : i64, tpu.core_type = #tpu.core_type<tc>, window_params = [{transform_indices = @transform_0, window_bounds = array<i64: 1, 4, 4, 8, 8>}, {transform_indices = @transform_1, window_bounds = array<i64: 8, 4>}, {pipeline_mode = #tpu.pipeline_mode<synchronous>, transform_indices = @transform_2, window_bounds = array<i64: 8, 32>}, {transform_indices = @transform_3, window_bounds = array<i64: 8>}, {transform_indices = @transform_4, window_bounds = array<i64: 1, 8, 4, 2, 8, 32>}]} {
    %c0 = arith.constant 0 : index
    %c0_0 = arith.constant 0 : index
    %c0_1 = arith.constant 0 : index
    %c0_2 = arith.constant 0 : index
    %c0_3 = arith.constant 0 : index
    %0 = vector.load %arg3[%c0, %c0_0, %c0_1, %c0_2, %c0_3] : memref<1x4x4x8x8xf32, #tpu.memory_space<vmem>>, vector<1x4x4x8x8xf32>
    %1 = vector.shape_cast %0 : vector<1x4x4x8x8xf32> to vector<4x4x8x8xf32>
    %2 = vector.extract_strided_slice %1 {offsets = [0, 0, 0, 0], sizes = [1, 4, 8, 8], strides = [1, 1, 1, 1]} : vector<4x4x8x8xf32> to vector<1x4x8x8xf32>
    %3 = vector.shape_cast %2 : vector<1x4x8x8xf32> to vector<4x8x8xf32>
    %c0_4 = arith.constant 0 : index
    %c0_5 = arith.constant 0 : index
    %4 = memref.load %arg4[%c0_4, %c0_5] : memref<8x4xf32, #tpu.memory_space<smem>>
    %5 = vector.broadcast %4 : f32 to vector<4x8x8xf32>
    %6 = arith.mulf %3, %5 : vector<4x8x8xf32>
    %7 = vector.extract_strided_slice %1 {offsets = [1, 0, 0, 0], sizes = [1, 4, 8, 8], strides = [1, 1, 1, 1]} : vector<4x4x8x8xf32> to vector<1x4x8x8xf32>
    %8 = vector.shape_cast %7 : vector<1x4x8x8xf32> to vector<4x8x8xf32>
    %c0_6 = arith.constant 0 : index
    %c1 = arith.constant 1 : index
    %9 = memref.load %arg4[%c0_6, %c1] : memref<8x4xf32, #tpu.memory_space<smem>>
    %10 = vector.broadcast %9 : f32 to vector<4x8x8xf32>
    %11 = arith.mulf %8, %10 : vector<4x8x8xf32>
    %12 = arith.addf %6, %11 : vector<4x8x8xf32>
    %13 = vector.extract_strided_slice %1 {offsets = [2, 0, 0, 0], sizes = [1, 4, 8, 8], strides = [1, 1, 1, 1]} : vector<4x4x8x8xf32> to vector<1x4x8x8xf32>
    %14 = vector.shape_cast %13 : vector<1x4x8x8xf32> to vector<4x8x8xf32>
    %c0_7 = arith.constant 0 : index
    %c2 = arith.constant 2 : index
    %15 = memref.load %arg4[%c0_7, %c2] : memref<8x4xf32, #tpu.memory_space<smem>>
    %16 = vector.broadcast %15 : f32 to vector<4x8x8xf32>
    %17 = arith.mulf %14, %16 : vector<4x8x8xf32>
    %18 = arith.addf %12, %17 : vector<4x8x8xf32>
    %19 = vector.extract_strided_slice %1 {offsets = [3, 0, 0, 0], sizes = [1, 4, 8, 8], strides = [1, 1, 1, 1]} : vector<4x4x8x8xf32> to vector<1x4x8x8xf32>
    %20 = vector.shape_cast %19 : vector<1x4x8x8xf32> to vector<4x8x8xf32>
    %c0_8 = arith.constant 0 : index
    %c3 = arith.constant 3 : index
    %21 = memref.load %arg4[%c0_8, %c3] : memref<8x4xf32, #tpu.memory_space<smem>>
    %22 = vector.broadcast %21 : f32 to vector<4x8x8xf32>
    %23 = arith.mulf %20, %22 : vector<4x8x8xf32>
    %24 = arith.addf %18, %23 : vector<4x8x8xf32>
    %c0_9 = arith.constant 0 : index
    %25 = memref.load %arg6[%c0_9] : memref<8xf32, #tpu.memory_space<smem>>
    %26 = vector.broadcast %25 : f32 to vector<4x8x8xf32>
    %27 = arith.addf %24, %26 : vector<4x8x8xf32>
    %c0_10 = arith.constant 0 : index
    %c0_11 = arith.constant 0 : index
    %c0_12 = arith.constant 0 : index
    %c0_13 = arith.constant 0 : index
    %28 = vector.load %arg8[%c0_10, %c0_11, %c0_12, %c0_13] : memref<8x4x8x8xf32, #tpu.memory_space<vmem>>, vector<1x4x8x8xf32>
    %29 = vector.shape_cast %28 : vector<1x4x8x8xf32> to vector<4x8x8xf32>
    %30 = vector.shape_cast %27 : vector<4x8x8xf32> to vector<1x4x8x8xf32>
    tpu.vector_store %arg8[%c0_10, %c0_11, %c0_12, %c0_13], %30 {strides = array<i32>} : memref<8x4x8x8xf32, #tpu.memory_space<vmem>>, vector<1x4x8x8xf32>,
    %31 = vector.extract_strided_slice %1 {offsets = [0, 0, 0, 0], sizes = [1, 4, 8, 8], strides = [1, 1, 1, 1]} : vector<4x4x8x8xf32> to vector<1x4x8x8xf32>
    %32 = vector.shape_cast %31 : vector<1x4x8x8xf32> to vector<4x8x8xf32>
    %c1_14 = arith.constant 1 : index
    %c0_15 = arith.constant 0 : index
    %33 = memref.load %arg4[%c1_14, %c0_15] : memref<8x4xf32, #tpu.memory_space<smem>>
    %34 = vector.broadcast %33 : f32 to vector<4x8x8xf32>
    %35 = arith.mulf %32, %34 : vector<4x8x8xf32>
    %36 = vector.extract_strided_slice %1 {offsets = [1, 0, 0, 0], sizes = [1, 4, 8, 8], strides = [1, 1, 1, 1]} : vector<4x4x8x8xf32> to vector<1x4x8x8xf32>
    %37 = vector.shape_cast %36 : vector<1x4x8x8xf32> to vector<4x8x8xf32>
    %c1_16 = arith.constant 1 : index
    %c1_17 = arith.constant 1 : index
    %38 = memref.load %arg4[%c1_16, %c1_17] : memref<8x4xf32, #tpu.memory_space<smem>>
    %39 = vector.broadcast %38 : f32 to vector<4x8x8xf32>
    %40 = arith.mulf %37, %39 : vector<4x8x8xf32>
    %41 = arith.addf %35, %40 : vector<4x8x8xf32>
    %42 = vector.extract_strided_slice %1 {offsets = [2, 0, 0, 0], sizes = [1, 4, 8, 8], strides = [1, 1, 1, 1]} : vector<4x4x8x8xf32> to vector<1x4x8x8xf32>
    %43 = vector.shape_cast %42 : vector<1x4x8x8xf32> to vector<4x8x8xf32>
    %c1_18 = arith.constant 1 : index
    %c2_19 = arith.constant 2 : index
    %44 = memref.load %arg4[%c1_18, %c2_19] : memref<8x4xf32, #tpu.memory_space<smem>>
    %45 = vector.broadcast %44 : f32 to vector<4x8x8xf32>
    %46 = arith.mulf %43, %45 : vector<4x8x8xf32>
    %47 = arith.addf %41, %46 : vector<4x8x8xf32>
    %48 = vector.extract_strided_slice %1 {offsets = [3, 0, 0, 0], sizes = [1, 4, 8, 8], strides = [1, 1, 1, 1]} : vector<4x4x8x8xf32> to vector<1x4x8x8xf32>
    %49 = vector.shape_cast %48 : vector<1x4x8x8xf32> to vector<4x8x8xf32>
    %c1_20 = arith.constant 1 : index
    %c3_21 = arith.constant 3 : index
    %50 = memref.load %arg4[%c1_20, %c3_21] : memref<8x4xf32, #tpu.memory_space<smem>>
    %51 = vector.broadcast %50 : f32 to vector<4x8x8xf32>
    %52 = arith.mulf %49, %51 : vector<4x8x8xf32>
    %53 = arith.addf %47, %52 : vector<4x8x8xf32>
    %c1_22 = arith.constant 1 : index
    %54 = memref.load %arg6[%c1_22] : memref<8xf32, #tpu.memory_space<smem>>
    %55 = vector.broadcast %54 : f32 to vector<4x8x8xf32>
    %56 = arith.addf %53, %55 : vector<4x8x8xf32>
    %c1_23 = arith.constant 1 : index
    %c0_24 = arith.constant 0 : index
    %c0_25 = arith.constant 0 : index
    %c0_26 = arith.constant 0 : index
    %57 = vector.load %arg8[%c1_23, %c0_24, %c0_25, %c0_26] : memref<8x4x8x8xf32, #tpu.memory_space<vmem>>, vector<1x4x8x8xf32>
    %58 = vector.shape_cast %57 : vector<1x4x8x8xf32> to vector<4x8x8xf32>
    %59 = vector.shape_cast %56 : vector<4x8x8xf32> to vector<1x4x8x8xf32>
    tpu.vector_store %arg8[%c1_23, %c0_24, %c0_25, %c0_26], %59 {strides = array<i32>} : memref<8x4x8x8xf32, #tpu.memory_space<vmem>>, vector<1x4x8x8xf32>,
    %60 = vector.extract_strided_slice %1 {offsets = [0, 0, 0, 0], sizes = [1, 4, 8, 8], strides = [1, 1, 1, 1]} : vector<4x4x8x8xf32> to vector<1x4x8x8xf32>
    %61 = vector.shape_cast %60 : vector<1x4x8x8xf32> to vector<4x8x8xf32>
    %c2_27 = arith.constant 2 : index
    %c0_28 = arith.constant 0 : index
    %62 = memref.load %arg4[%c2_27, %c0_28] : memref<8x4xf32, #tpu.memory_space<smem>>
    %63 = vector.broadcast %62 : f32 to vector<4x8x8xf32>
    %64 = arith.mulf %61, %63 : vector<4x8x8xf32>
    %65 = vector.extract_strided_slice %1 {offsets = [1, 0, 0, 0], sizes = [1, 4, 8, 8], strides = [1, 1, 1, 1]} : vector<4x4x8x8xf32> to vector<1x4x8x8xf32>
    %66 = vector.shape_cast %65 : vector<1x4x8x8xf32> to vector<4x8x8xf32>
    %c2_29 = arith.constant 2 : index
    %c1_30 = arith.constant 1 : index
    %67 = memref.load %arg4[%c2_29, %c1_30] : memref<8x4xf32, #tpu.memory_space<smem>>
    %68 = vector.broadcast %67 : f32 to vector<4x8x8xf32>
    %69 = arith.mulf %66, %68 : vector<4x8x8xf32>
    %70 = arith.addf %64, %69 : vector<4x8x8xf32>
    %71 = vector.extract_strided_slice %1 {offsets = [2, 0, 0, 0], sizes = [1, 4, 8, 8], strides = [1, 1, 1, 1]} : vector<4x4x8x8xf32> to vector<1x4x8x8xf32>
    %72 = vector.shape_cast %71 : vector<1x4x8x8xf32> to vector<4x8x8xf32>
    %c2_31 = arith.constant 2 : index
    %c2_32 = arith.constant 2 : index
    %73 = memref.load %arg4[%c2_31, %c2_32] : memref<8x4xf32, #tpu.memory_space<smem>>
    %74 = vector.broadcast %73 : f32 to vector<4x8x8xf32>
    %75 = arith.mulf %72, %74 : vector<4x8x8xf32>
    %76 = arith.addf %70, %75 : vector<4x8x8xf32>
    %77 = vector.extract_strided_slice %1 {offsets = [3, 0, 0, 0], sizes = [1, 4, 8, 8], strides = [1, 1, 1, 1]} : vector<4x4x8x8xf32> to vector<1x4x8x8xf32>
    %78 = vector.shape_cast %77 : vector<1x4x8x8xf32> to vector<4x8x8xf32>
    %c2_33 = arith.constant 2 : index
    %c3_34 = arith.constant 3 : index
    %79 = memref.load %arg4[%c2_33, %c3_34] : memref<8x4xf32, #tpu.memory_space<smem>>
    %80 = vector.broadcast %79 : f32 to vector<4x8x8xf32>
    %81 = arith.mulf %78, %80 : vector<4x8x8xf32>
    %82 = arith.addf %76, %81 : vector<4x8x8xf32>
    %c2_35 = arith.constant 2 : index
    %83 = memref.load %arg6[%c2_35] : memref<8xf32, #tpu.memory_space<smem>>
    %84 = vector.broadcast %83 : f32 to vector<4x8x8xf32>
    %85 = arith.addf %82, %84 : vector<4x8x8xf32>
    %c2_36 = arith.constant 2 : index
    %c0_37 = arith.constant 0 : index
    %c0_38 = arith.constant 0 : index
    %c0_39 = arith.constant 0 : index
    %86 = vector.load %arg8[%c2_36, %c0_37, %c0_38, %c0_39] : memref<8x4x8x8xf32, #tpu.memory_space<vmem>>, vector<1x4x8x8xf32>
    %87 = vector.shape_cast %86 : vector<1x4x8x8xf32> to vector<4x8x8xf32>
    %88 = vector.shape_cast %85 : vector<4x8x8xf32> to vector<1x4x8x8xf32>
    tpu.vector_store %arg8[%c2_36, %c0_37, %c0_38, %c0_39], %88 {strides = array<i32>} : memref<8x4x8x8xf32, #tpu.memory_space<vmem>>, vector<1x4x8x8xf32>,
    %89 = vector.extract_strided_slice %1 {offsets = [0, 0, 0, 0], sizes = [1, 4, 8, 8], strides = [1, 1, 1, 1]} : vector<4x4x8x8xf32> to vector<1x4x8x8xf32>
    %90 = vector.shape_cast %89 : vector<1x4x8x8xf32> to vector<4x8x8xf32>
    %c3_40 = arith.constant 3 : index
    %c0_41 = arith.constant 0 : index
    %91 = memref.load %arg4[%c3_40, %c0_41] : memref<8x4xf32, #tpu.memory_space<smem>>
    %92 = vector.broadcast %91 : f32 to vector<4x8x8xf32>
    %93 = arith.mulf %90, %92 : vector<4x8x8xf32>
    %94 = vector.extract_strided_slice %1 {offsets = [1, 0, 0, 0], sizes = [1, 4, 8, 8], strides = [1, 1, 1, 1]} : vector<4x4x8x8xf32> to vector<1x4x8x8xf32>
    %95 = vector.shape_cast %94 : vector<1x4x8x8xf32> to vector<4x8x8xf32>
    %c3_42 = arith.constant 3 : index
    %c1_43 = arith.constant 1 : index
    %96 = memref.load %arg4[%c3_42, %c1_43] : memref<8x4xf32, #tpu.memory_space<smem>>
    %97 = vector.broadcast %96 : f32 to vector<4x8x8xf32>
    %98 = arith.mulf %95, %97 : vector<4x8x8xf32>
    %99 = arith.addf %93, %98 : vector<4x8x8xf32>
    %100 = vector.extract_strided_slice %1 {offsets = [2, 0, 0, 0], sizes = [1, 4, 8, 8], strides = [1, 1, 1, 1]} : vector<4x4x8x8xf32> to vector<1x4x8x8xf32>
    %101 = vector.shape_cast %100 : vector<1x4x8x8xf32> to vector<4x8x8xf32>
    %c3_44 = arith.constant 3 : index
    %c2_45 = arith.constant 2 : index
    %102 = memref.load %arg4[%c3_44, %c2_45] : memref<8x4xf32, #tpu.memory_space<smem>>
    %103 = vector.broadcast %102 : f32 to vector<4x8x8xf32>
    %104 = arith.mulf %101, %103 : vector<4x8x8xf32>
    %105 = arith.addf %99, %104 : vector<4x8x8xf32>
    %106 = vector.extract_strided_slice %1 {offsets = [3, 0, 0, 0], sizes = [1, 4, 8, 8], strides = [1, 1, 1, 1]} : vector<4x4x8x8xf32> to vector<1x4x8x8xf32>
    %107 = vector.shape_cast %106 : vector<1x4x8x8xf32> to vector<4x8x8xf32>
    %c3_46 = arith.constant 3 : index
    %c3_47 = arith.constant 3 : index
    %108 = memref.load %arg4[%c3_46, %c3_47] : memref<8x4xf32, #tpu.memory_space<smem>>
    %109 = vector.broadcast %108 : f32 to vector<4x8x8xf32>
    %110 = arith.mulf %107, %109 : vector<4x8x8xf32>
    %111 = arith.addf %105, %110 : vector<4x8x8xf32>
    %c3_48 = arith.constant 3 : index
    %112 = memref.load %arg6[%c3_48] : memref<8xf32, #tpu.memory_space<smem>>
    %113 = vector.broadcast %112 : f32 to vector<4x8x8xf32>
    %114 = arith.addf %111, %113 : vector<4x8x8xf32>
    %c3_49 = arith.constant 3 : index
    %c0_50 = arith.constant 0 : index
    %c0_51 = arith.constant 0 : index
    %c0_52 = arith.constant 0 : index
    %115 = vector.load %arg8[%c3_49, %c0_50, %c0_51, %c0_52] : memref<8x4x8x8xf32, #tpu.memory_space<vmem>>, vector<1x4x8x8xf32>
    %116 = vector.shape_cast %115 : vector<1x4x8x8xf32> to vector<4x8x8xf32>
    %117 = vector.shape_cast %114 : vector<4x8x8xf32> to vector<1x4x8x8xf32>
    tpu.vector_store %arg8[%c3_49, %c0_50, %c0_51, %c0_52], %117 {strides = array<i32>} : memref<8x4x8x8xf32, #tpu.memory_space<vmem>>, vector<1x4x8x8xf32>,
    %118 = vector.extract_strided_slice %1 {offsets = [0, 0, 0, 0], sizes = [1, 4, 8, 8], strides = [1, 1, 1, 1]} : vector<4x4x8x8xf32> to vector<1x4x8x8xf32>
    %119 = vector.shape_cast %118 : vector<1x4x8x8xf32> to vector<4x8x8xf32>
    %c4 = arith.constant 4 : index
    %c0_53 = arith.constant 0 : index
    %120 = memref.load %arg4[%c4, %c0_53] : memref<8x4xf32, #tpu.memory_space<smem>>
    %121 = vector.broadcast %120 : f32 to vector<4x8x8xf32>
    %122 = arith.mulf %119, %121 : vector<4x8x8xf32>
    %123 = vector.extract_strided_slice %1 {offsets = [1, 0, 0, 0], sizes = [1, 4, 8, 8], strides = [1, 1, 1, 1]} : vector<4x4x8x8xf32> to vector<1x4x8x8xf32>
    %124 = vector.shape_cast %123 : vector<1x4x8x8xf32> to vector<4x8x8xf32>
    %c4_54 = arith.constant 4 : index
    %c1_55 = arith.constant 1 : index
    %125 = memref.load %arg4[%c4_54, %c1_55] : memref<8x4xf32, #tpu.memory_space<smem>>
    %126 = vector.broadcast %125 : f32 to vector<4x8x8xf32>
    %127 = arith.mulf %124, %126 : vector<4x8x8xf32>
    %128 = arith.addf %122, %127 : vector<4x8x8xf32>
    %129 = vector.extract_strided_slice %1 {offsets = [2, 0, 0, 0], sizes = [1, 4, 8, 8], strides = [1, 1, 1, 1]} : vector<4x4x8x8xf32> to vector<1x4x8x8xf32>
    %130 = vector.shape_cast %129 : vector<1x4x8x8xf32> to vector<4x8x8xf32>
    %c4_56 = arith.constant 4 : index
    %c2_57 = arith.constant 2 : index
    %131 = memref.load %arg4[%c4_56, %c2_57] : memref<8x4xf32, #tpu.memory_space<smem>>
    %132 = vector.broadcast %131 : f32 to vector<4x8x8xf32>
    %133 = arith.mulf %130, %132 : vector<4x8x8xf32>
    %134 = arith.addf %128, %133 : vector<4x8x8xf32>
    %135 = vector.extract_strided_slice %1 {offsets = [3, 0, 0, 0], sizes = [1, 4, 8, 8], strides = [1, 1, 1, 1]} : vector<4x4x8x8xf32> to vector<1x4x8x8xf32>
    %136 = vector.shape_cast %135 : vector<1x4x8x8xf32> to vector<4x8x8xf32>
    %c4_58 = arith.constant 4 : index
    %c3_59 = arith.constant 3 : index
    %137 = memref.load %arg4[%c4_58, %c3_59] : memref<8x4xf32, #tpu.memory_space<smem>>
    %138 = vector.broadcast %137 : f32 to vector<4x8x8xf32>
    %139 = arith.mulf %136, %138 : vector<4x8x8xf32>
    %140 = arith.addf %134, %139 : vector<4x8x8xf32>
    %c4_60 = arith.constant 4 : index
    %141 = memref.load %arg6[%c4_60] : memref<8xf32, #tpu.memory_space<smem>>
    %142 = vector.broadcast %141 : f32 to vector<4x8x8xf32>
    %143 = arith.addf %140, %142 : vector<4x8x8xf32>
    %c4_61 = arith.constant 4 : index
    %c0_62 = arith.constant 0 : index
    %c0_63 = arith.constant 0 : index
    %c0_64 = arith.constant 0 : index
    %144 = vector.load %arg8[%c4_61, %c0_62, %c0_63, %c0_64] : memref<8x4x8x8xf32, #tpu.memory_space<vmem>>, vector<1x4x8x8xf32>
    %145 = vector.shape_cast %144 : vector<1x4x8x8xf32> to vector<4x8x8xf32>
    %146 = vector.shape_cast %143 : vector<4x8x8xf32> to vector<1x4x8x8xf32>
    tpu.vector_store %arg8[%c4_61, %c0_62, %c0_63, %c0_64], %146 {strides = array<i32>} : memref<8x4x8x8xf32, #tpu.memory_space<vmem>>, vector<1x4x8x8xf32>,
    %147 = vector.extract_strided_slice %1 {offsets = [0, 0, 0, 0], sizes = [1, 4, 8, 8], strides = [1, 1, 1, 1]} : vector<4x4x8x8xf32> to vector<1x4x8x8xf32>
    %148 = vector.shape_cast %147 : vector<1x4x8x8xf32> to vector<4x8x8xf32>
    %c5 = arith.constant 5 : index
    %c0_65 = arith.constant 0 : index
    %149 = memref.load %arg4[%c5, %c0_65] : memref<8x4xf32, #tpu.memory_space<smem>>
    %150 = vector.broadcast %149 : f32 to vector<4x8x8xf32>
    %151 = arith.mulf %148, %150 : vector<4x8x8xf32>
    %152 = vector.extract_strided_slice %1 {offsets = [1, 0, 0, 0], sizes = [1, 4, 8, 8], strides = [1, 1, 1, 1]} : vector<4x4x8x8xf32> to vector<1x4x8x8xf32>
    %153 = vector.shape_cast %152 : vector<1x4x8x8xf32> to vector<4x8x8xf32>
    %c5_66 = arith.constant 5 : index
    %c1_67 = arith.constant 1 : index
    %154 = memref.load %arg4[%c5_66, %c1_67] : memref<8x4xf32, #tpu.memory_space<smem>>
    %155 = vector.broadcast %154 : f32 to vector<4x8x8xf32>
    %156 = arith.mulf %153, %155 : vector<4x8x8xf32>
    %157 = arith.addf %151, %156 : vector<4x8x8xf32>
    %158 = vector.extract_strided_slice %1 {offsets = [2, 0, 0, 0], sizes = [1, 4, 8, 8], strides = [1, 1, 1, 1]} : vector<4x4x8x8xf32> to vector<1x4x8x8xf32>
    %159 = vector.shape_cast %158 : vector<1x4x8x8xf32> to vector<4x8x8xf32>
    %c5_68 = arith.constant 5 : index
    %c2_69 = arith.constant 2 : index
    %160 = memref.load %arg4[%c5_68, %c2_69] : memref<8x4xf32, #tpu.memory_space<smem>>
    %161 = vector.broadcast %160 : f32 to vector<4x8x8xf32>
    %162 = arith.mulf %159, %161 : vector<4x8x8xf32>
    %163 = arith.addf %157, %162 : vector<4x8x8xf32>
    %164 = vector.extract_strided_slice %1 {offsets = [3, 0, 0, 0], sizes = [1, 4, 8, 8], strides = [1, 1, 1, 1]} : vector<4x4x8x8xf32> to vector<1x4x8x8xf32>
    %165 = vector.shape_cast %164 : vector<1x4x8x8xf32> to vector<4x8x8xf32>
    %c5_70 = arith.constant 5 : index
    %c3_71 = arith.constant 3 : index
    %166 = memref.load %arg4[%c5_70, %c3_71] : memref<8x4xf32, #tpu.memory_space<smem>>
    %167 = vector.broadcast %166 : f32 to vector<4x8x8xf32>
    %168 = arith.mulf %165, %167 : vector<4x8x8xf32>
    %169 = arith.addf %163, %168 : vector<4x8x8xf32>
    %c5_72 = arith.constant 5 : index
    %170 = memref.load %arg6[%c5_72] : memref<8xf32, #tpu.memory_space<smem>>
    %171 = vector.broadcast %170 : f32 to vector<4x8x8xf32>
    %172 = arith.addf %169, %171 : vector<4x8x8xf32>
    %c5_73 = arith.constant 5 : index
    %c0_74 = arith.constant 0 : index
    %c0_75 = arith.constant 0 : index
    %c0_76 = arith.constant 0 : index
    %173 = vector.load %arg8[%c5_73, %c0_74, %c0_75, %c0_76] : memref<8x4x8x8xf32, #tpu.memory_space<vmem>>, vector<1x4x8x8xf32>
    %174 = vector.shape_cast %173 : vector<1x4x8x8xf32> to vector<4x8x8xf32>
    %175 = vector.shape_cast %172 : vector<4x8x8xf32> to vector<1x4x8x8xf32>
    tpu.vector_store %arg8[%c5_73, %c0_74, %c0_75, %c0_76], %175 {strides = array<i32>} : memref<8x4x8x8xf32, #tpu.memory_space<vmem>>, vector<1x4x8x8xf32>,
    %176 = vector.extract_strided_slice %1 {offsets = [0, 0, 0, 0], sizes = [1, 4, 8, 8], strides = [1, 1, 1, 1]} : vector<4x4x8x8xf32> to vector<1x4x8x8xf32>
    %177 = vector.shape_cast %176 : vector<1x4x8x8xf32> to vector<4x8x8xf32>
    %c6 = arith.constant 6 : index
    %c0_77 = arith.constant 0 : index
    %178 = memref.load %arg4[%c6, %c0_77] : memref<8x4xf32, #tpu.memory_space<smem>>
    %179 = vector.broadcast %178 : f32 to vector<4x8x8xf32>
    %180 = arith.mulf %177, %179 : vector<4x8x8xf32>
    %181 = vector.extract_strided_slice %1 {offsets = [1, 0, 0, 0], sizes = [1, 4, 8, 8], strides = [1, 1, 1, 1]} : vector<4x4x8x8xf32> to vector<1x4x8x8xf32>
    %182 = vector.shape_cast %181 : vector<1x4x8x8xf32> to vector<4x8x8xf32>
    %c6_78 = arith.constant 6 : index
    %c1_79 = arith.constant 1 : index
    %183 = memref.load %arg4[%c6_78, %c1_79] : memref<8x4xf32, #tpu.memory_space<smem>>
    %184 = vector.broadcast %183 : f32 to vector<4x8x8xf32>
    %185 = arith.mulf %182, %184 : vector<4x8x8xf32>
    %186 = arith.addf %180, %185 : vector<4x8x8xf32>
    %187 = vector.extract_strided_slice %1 {offsets = [2, 0, 0, 0], sizes = [1, 4, 8, 8], strides = [1, 1, 1, 1]} : vector<4x4x8x8xf32> to vector<1x4x8x8xf32>
    %188 = vector.shape_cast %187 : vector<1x4x8x8xf32> to vector<4x8x8xf32>
    %c6_80 = arith.constant 6 : index
    %c2_81 = arith.constant 2 : index
    %189 = memref.load %arg4[%c6_80, %c2_81] : memref<8x4xf32, #tpu.memory_space<smem>>
    %190 = vector.broadcast %189 : f32 to vector<4x8x8xf32>
    %191 = arith.mulf %188, %190 : vector<4x8x8xf32>
    %192 = arith.addf %186, %191 : vector<4x8x8xf32>
    %193 = vector.extract_strided_slice %1 {offsets = [3, 0, 0, 0], sizes = [1, 4, 8, 8], strides = [1, 1, 1, 1]} : vector<4x4x8x8xf32> to vector<1x4x8x8xf32>
    %194 = vector.shape_cast %193 : vector<1x4x8x8xf32> to vector<4x8x8xf32>
    %c6_82 = arith.constant 6 : index
    %c3_83 = arith.constant 3 : index
    %195 = memref.load %arg4[%c6_82, %c3_83] : memref<8x4xf32, #tpu.memory_space<smem>>
    %196 = vector.broadcast %195 : f32 to vector<4x8x8xf32>
    %197 = arith.mulf %194, %196 : vector<4x8x8xf32>
    %198 = arith.addf %192, %197 : vector<4x8x8xf32>
    %c6_84 = arith.constant 6 : index
    %199 = memref.load %arg6[%c6_84] : memref<8xf32, #tpu.memory_space<smem>>
    %200 = vector.broadcast %199 : f32 to vector<4x8x8xf32>
    %201 = arith.addf %198, %200 : vector<4x8x8xf32>
    %c6_85 = arith.constant 6 : index
    %c0_86 = arith.constant 0 : index
    %c0_87 = arith.constant 0 : index
    %c0_88 = arith.constant 0 : index
    %202 = vector.load %arg8[%c6_85, %c0_86, %c0_87, %c0_88] : memref<8x4x8x8xf32, #tpu.memory_space<vmem>>, vector<1x4x8x8xf32>
    %203 = vector.shape_cast %202 : vector<1x4x8x8xf32> to vector<4x8x8xf32>
    %204 = vector.shape_cast %201 : vector<4x8x8xf32> to vector<1x4x8x8xf32>
    tpu.vector_store %arg8[%c6_85, %c0_86, %c0_87, %c0_88], %204 {strides = array<i32>} : memref<8x4x8x8xf32, #tpu.memory_space<vmem>>, vector<1x4x8x8xf32>,
    %205 = vector.extract_strided_slice %1 {offsets = [0, 0, 0, 0], sizes = [1, 4, 8, 8], strides = [1, 1, 1, 1]} : vector<4x4x8x8xf32> to vector<1x4x8x8xf32>
    %206 = vector.shape_cast %205 : vector<1x4x8x8xf32> to vector<4x8x8xf32>
    %c7 = arith.constant 7 : index
    %c0_89 = arith.constant 0 : index
    %207 = memref.load %arg4[%c7, %c0_89] : memref<8x4xf32, #tpu.memory_space<smem>>
    %208 = vector.broadcast %207 : f32 to vector<4x8x8xf32>
    %209 = arith.mulf %206, %208 : vector<4x8x8xf32>
    %210 = vector.extract_strided_slice %1 {offsets = [1, 0, 0, 0], sizes = [1, 4, 8, 8], strides = [1, 1, 1, 1]} : vector<4x4x8x8xf32> to vector<1x4x8x8xf32>
    %211 = vector.shape_cast %210 : vector<1x4x8x8xf32> to vector<4x8x8xf32>
    %c7_90 = arith.constant 7 : index
    %c1_91 = arith.constant 1 : index
    %212 = memref.load %arg4[%c7_90, %c1_91] : memref<8x4xf32, #tpu.memory_space<smem>>
    %213 = vector.broadcast %212 : f32 to vector<4x8x8xf32>
    %214 = arith.mulf %211, %213 : vector<4x8x8xf32>
    %215 = arith.addf %209, %214 : vector<4x8x8xf32>
    %216 = vector.extract_strided_slice %1 {offsets = [2, 0, 0, 0], sizes = [1, 4, 8, 8], strides = [1, 1, 1, 1]} : vector<4x4x8x8xf32> to vector<1x4x8x8xf32>
    %217 = vector.shape_cast %216 : vector<1x4x8x8xf32> to vector<4x8x8xf32>
    %c7_92 = arith.constant 7 : index
    %c2_93 = arith.constant 2 : index
    %218 = memref.load %arg4[%c7_92, %c2_93] : memref<8x4xf32, #tpu.memory_space<smem>>
    %219 = vector.broadcast %218 : f32 to vector<4x8x8xf32>
    %220 = arith.mulf %217, %219 : vector<4x8x8xf32>
    %221 = arith.addf %215, %220 : vector<4x8x8xf32>
    %222 = vector.extract_strided_slice %1 {offsets = [3, 0, 0, 0], sizes = [1, 4, 8, 8], strides = [1, 1, 1, 1]} : vector<4x4x8x8xf32> to vector<1x4x8x8xf32>
    %223 = vector.shape_cast %222 : vector<1x4x8x8xf32> to vector<4x8x8xf32>
    %c7_94 = arith.constant 7 : index
    %c3_95 = arith.constant 3 : index
    %224 = memref.load %arg4[%c7_94, %c3_95] : memref<8x4xf32, #tpu.memory_space<smem>>
    %225 = vector.broadcast %224 : f32 to vector<4x8x8xf32>
    %226 = arith.mulf %223, %225 : vector<4x8x8xf32>
    %227 = arith.addf %221, %226 : vector<4x8x8xf32>
    %c7_96 = arith.constant 7 : index
    %228 = memref.load %arg6[%c7_96] : memref<8xf32, #tpu.memory_space<smem>>
    %229 = vector.broadcast %228 : f32 to vector<4x8x8xf32>
    %230 = arith.addf %227, %229 : vector<4x8x8xf32>
    %c7_97 = arith.constant 7 : index
    %c0_98 = arith.constant 0 : index
    %c0_99 = arith.constant 0 : index
    %c0_100 = arith.constant 0 : index
    %231 = vector.load %arg8[%c7_97, %c0_98, %c0_99, %c0_100] : memref<8x4x8x8xf32, #tpu.memory_space<vmem>>, vector<1x4x8x8xf32>
    %232 = vector.shape_cast %231 : vector<1x4x8x8xf32> to vector<4x8x8xf32>
    %233 = vector.shape_cast %230 : vector<4x8x8xf32> to vector<1x4x8x8xf32>
    tpu.vector_store %arg8[%c7_97, %c0_98, %c0_99, %c0_100], %233 {strides = array<i32>} : memref<8x4x8x8xf32, #tpu.memory_space<vmem>>, vector<1x4x8x8xf32>,
    %c0_101 = arith.constant 0 : index
    %c0_102 = arith.constant 0 : index
    %c0_103 = arith.constant 0 : index
    %c0_104 = arith.constant 0 : index
    %234 = vector.load %arg8[%c0_101, %c0_102, %c0_103, %c0_104] : memref<8x4x8x8xf32, #tpu.memory_space<vmem>>, vector<8x4x8x8xf32>
    %235 = vector.shape_cast %234 : vector<8x4x8x8xf32> to vector<256x8xf32>
    %236 = arith.truncf %235 : vector<256x8xf32> to vector<256x8xbf16>
    %237 = arith.extf %236 : vector<256x8xbf16> to vector<256x8xf32>
    %238 = arith.subf %235, %237 : vector<256x8xf32>
    %c0_105 = arith.constant 0 : index
    %c0_106 = arith.constant 0 : index
    %239 = vector.load %arg5[%c0_105, %c0_106] : memref<8x32xf32, #tpu.memory_space<vmem>>, vector<8x32xf32>
    %cst = arith.constant dense<0.000000e+00> : vector<256x32xf32>
    %240 = tpu.matmul %237, %239, %cst {dimension_numbers = #tpu.dot_dimension_numbers<[1], [0], [0], [1], [0, 0, 1, 1], [], []>} : vector<256x8xf32>, vector<8x32xf32>, vector<256x32xf32> -> vector<256x32xf32>
    %cst_107 = arith.constant dense<0.000000e+00> : vector<256x32xf32>
    %241 = tpu.matmul %238, %239, %cst_107 {dimension_numbers = #tpu.dot_dimension_numbers<[1], [0], [0], [1], [0, 0, 1, 1], [], []>} : vector<256x8xf32>, vector<8x32xf32>, vector<256x32xf32> -> vector<256x32xf32>
    %242 = arith.addf %240, %241 : vector<256x32xf32>
    %243 = vector.shape_cast %242 : vector<256x32xf32> to vector<8x4x1x8x32xf32>
    %244 = vector.shape_cast %243 : vector<8x4x1x8x32xf32> to vector<8x4x1x8x32xf32>
    %245 = vector.broadcast %244 : vector<8x4x1x8x32xf32> to vector<8x4x2x8x32xf32>
    %c0_108 = arith.constant 0 : index
    %c0_109 = arith.constant 0 : index
    %c0_110 = arith.constant 0 : index
    %c0_111 = arith.constant 0 : index
    %c0_112 = arith.constant 0 : index
    %c0_113 = arith.constant 0 : index
    %246 = vector.load %arg7[%c0_108, %c0_109, %c0_110, %c0_111, %c0_112, %c0_113] : memref<1x8x4x2x8x32xf32, #tpu.memory_space<vmem>>, vector<1x8x4x2x8x32xf32>
    %247 = vector.shape_cast %246 : vector<1x8x4x2x8x32xf32> to vector<8x4x2x8x32xf32>
    %248 = vector.shape_cast %245 : vector<8x4x2x8x32xf32> to vector<1x8x4x2x8x32xf32>
    tpu.vector_store %arg7[%c0_108, %c0_109, %c0_110, %c0_111, %c0_112, %c0_113], %248 {strides = array<i32>} : memref<1x8x4x2x8x32xf32, #tpu.memory_space<vmem>>, vector<1x8x4x2x8x32xf32>,
    return
  }
  func.func @transform_0(%arg0: i32, %arg1: i32, %arg2: i32) -> (i32, i32, i32, i32, i32) {
    %c0_i32 = arith.constant 0 : i32
    %c0_i32_0 = arith.constant 0 : i32
    %c0_i32_1 = arith.constant 0 : i32
    return %arg0, %c0_i32, %arg1, %arg2, %c0_i32_0 : i32, i32, i32, i32, i32
  }
  func.func @transform_1(%arg0: i32, %arg1: i32, %arg2: i32) -> (i32, i32) {
    %c0_i32 = arith.constant 0 : i32
    %c0_i32_0 = arith.constant 0 : i32
    %c0_i32_1 = arith.constant 0 : i32
    return %c0_i32, %c0_i32_0 : i32, i32
  }
  func.func @transform_2(%arg0: i32, %arg1: i32, %arg2: i32) -> (i32, i32) {
    %c0_i32 = arith.constant 0 : i32
    %c0_i32_0 = arith.constant 0 : i32
    %c0_i32_1 = arith.constant 0 : i32
    return %c0_i32, %c0_i32_0 : i32, i32
  }
  func.func @transform_3(%arg0: i32, %arg1: i32, %arg2: i32) -> i32 {
    %c0_i32 = arith.constant 0 : i32
    %c0_i32_0 = arith.constant 0 : i32
    return %c0_i32 : i32
  }
  func.func @transform_4(%arg0: i32, %arg1: i32, %arg2: i32) -> (i32, i32, i32, i32, i32, i32) {
    %c0_i32 = arith.constant 0 : i32
    %c0_i32_0 = arith.constant 0 : i32
    %c0_i32_1 = arith.constant 0 : i32
    %c0_i32_2 = arith.constant 0 : i32
    return %arg0, %c0_i32, %arg1, %c0_i32_0, %arg2, %c0_i32_1 : i32, i32, i32, i32, i32, i32
  }
}

</mosaic_0001>

<bundles_post_ra>
// kernel: tpu_custom_call.1
= control target key start
LH: loop header
LB: loop body
LE: loop exit
PB: predicated region body
PF: predicated region fallthrough
CT: control target
= control target key end

     0   :  { %s2786_s0 = inlined_call_operand.hbm [shape: f32[2,4,4,8,8], index: 0, kind: input, shape index: {}]   ;;  %s2787_s1 = inlined_call_operand.vmem [shape: f32[8,4], index: 1, kind: input, shape index: {}]   ;;  %s2788_s2 = inlined_call_operand.vmem [shape: f32[8,32], index: 2, kind: input, shape index: {}]   ;;  %s2789_s3 = inlined_call_operand.vmem [shape: f32[8], index: 3, kind: input, shape index: {}]   ;;  %s2790_s4 = inlined_call_operand.hbm [shape: f32[2,8,4,2,8,32], index: 4, kind: output, shape index: {}]  }
   0x1   :  { %2791 = sst [smem:[#allocation15_spill]] %s2787_s1 }
   0x2   :  { %2792 = sst [smem:[#allocation16_spill]] %s2789_s3 }
   0x3   :  { %9 = vsyncpa [#allocation4], 0 }
   0x4   :  { %11 = vsyncpa [#allocation4 + $0x1], 0 }
   0x5   :  { %12 = vsyncpa [#allocation6], 0 }
   0x6   :  { %13 = vsyncpa [#allocation9], 0 }
   0x7   :  { %14 = vsyncpa [#allocation5], 0 }
   0x8   :  { %16 = vsyncpa [#allocation5 + $0x1], 0  ;;  %s1810_s15 = smov 0   ;;  %s1812_s16 = smov 0  }
   0x9   :  { %s1814_s17 = smov 0   ;;  %s1816_s18 = smov 0  }
   0xa   :  { %s1818_s19 = smov 0   ;;  %s1820_s20 = smov 0  }
   0xb LB: > { %s1415_s21 = sadd.s32 4294967295, %s1777_s20   ;;  %s1416_s22 = sadd.s32 4294967294, %s1777_s20   ;;  %s1777_s20 = sphi %s1820_s20, %s22_s20   ;;  %s1773_s19 = sphi %s1818_s19, %s2806_s19   ;;  %s1769_s18 = sphi %s1816_s18, %s2805_s18   ;;  %s1765_s17 = sphi %s1814_s17, %s2804_s17   ;;  %s1761_s16 = sphi %s1812_s16, %s2803_s16   ;;  %s1757_s15 = sphi %s1810_s15, %s2802_s15  }
   0xc   : > { %s52_s23 = sadd.s32 1, %s1765_s17  ;;  %p59_p0 = scmp.ne.s32.totalorder %s1765_s17, %s1761_s16 }
   0xd   : > { %p60_p1 = scmp.eq.s32.totalorder %s1777_s20, 0  ;;  %p65_p2 = scmp.ne.s32.totalorder %s1761_s16, %s1757_s15 }
   0xe   : > { %p1848_p3 = scmp.eq.s32.totalorder %s1415_s21, 0  ;;  %p156_p4 = scmp.eq.s32.totalorder %s1415_s21, 1 }
   0xf   : > { %p1852_p5 = por %p60_p1, %p59_p0  ;;  %p162_p6 = scmp.eq.s32.totalorder %s1416_s22, 1 }
  0x10   : > { %p1858_p7 = por %p1848_p3, %p65_p2  ;;  %p1862_p8 = por %p156_p4, %p59_p0 }
  0x11   : > { %p1866_p9 = por %p162_p6, %p65_p2  ;;  %p1417_p10 = scmp.ge.s32.totalorder %s1777_s20, 1 }
  0x12   : > { %p169_p11 = scmp.lt.s32.totalorder %s1777_s20, 3  ;;  %s2798_s1 = sld [smem:[#allocation15_spill]] }
  0x13   : > { %p1420_p13 = scmp.ge.s32.totalorder %s1777_s20, 2  ;;  %p1569_p0 = scmp.lt.s32.totalorder %s1777_s20, 2 }
  0x14   : > { %p1875_p12 = pnand %p1417_p10, %p169_p11  ;;  %s2800_s3 = sld [smem:[#allocation16_spill]] }
  0x15   : > { %p1888_p2 = pnand %p1569_p0, %p1852_p5  ;;  %s1779_s11 = smov [#allocation7]  }
  0x16   : > { %p1552_p1 = pneg %p1875_p12  ;;  %s1780_s12 = smov [#allocation8]  }
  0x17   : > { %s41_s13 = sadd.s32 1, %s1773_s19  ;;  %s205_s14 = sand.u32 1, %s1765_s17  }
  0x18   : > { %s181_s5 = sshll.u32 %s2798_s1, 4  ;;  %p1553_p4 = pnand %p1552_p1, %p1848_p3  ;;  %s182_s5 = int_to_ptr.vmem [resolvable:$true] %s181_s5 }
  0x19   : > { %p43_p6 = scmp.ge.s32.totalorder %s41_s13, 2  ;;  %s1421_s21 = sshll.u32 %s205_s14, 7 }
  0x1a   : > { %s194_s9 = sshll.u32 %s2800_s3, 4  ;;  %s1536_s22 = sshll.u32 %s1773_s19, 7  ;;  %s195_s9 = int_to_ptr.vmem [resolvable:$true] %s194_s9 }
  0x1b   : > { %1555 = dma.vmem_to_smem (!%p1553_p4), %s182_s5, 128, %s1779_s11, [#allocation6]  }
  0x1c   : > { %1558 = dma.vmem_to_smem (!%p1553_p4), %s195_s9, 16, %s1780_s12, [#allocation9]  }
  0x1d   : > { %s2808_s13 = smov (%p43_p6, %s41_s13), 0  ;;  %s217_s30 = scalar_lea.hbm %s2786_s0, %s1536_s22 }
  0x1e   : > { %s45_s7 = ssub.s32 %s1773_s19, %s2808_s13  ;;  %s218_s8 = sshll.u32 %s217_s30, 4  ;;  %s219_s8 = int_to_ptr.hbm [resolvable:$true] %s218_s8 }
  0x1f   : > { %p50_p5 = scmp.eq.s32.totalorder %s45_s7, 0  ;;  %s209_s5 = scalar_lea.vmem [#allocation3], %s1421_s21 }
  0x20   : > { %s220_s11 = sshll.u32 %s209_s5, 4  ;;  %s206_s12 = scalar_lea.sflag [#allocation4], %s205_s14  ;;  %s221_s11 = int_to_ptr.vmem [resolvable:$true] %s220_s11 }
  0x21   : > { %s1907_s9 = scalar_select %p50_p5, %s1765_s17, %s52_s23  }
  0x22   : > { %s1781_s1 = smov 128   ;;  %s1782_s3 = smov 8  }
  0x23   : > { %1562 = dma.hbm_to_vmem [thread:$0]  (!%p1888_p2), %s219_s8, 2048, %s221_s11, %s206_s12, %s1781_s1, %s1781_s1, %s1782_s3  }
  0x24   : > { %232 = sbr.rel (%p1875_p12) target bundleno = 340 (0x154), region = 36  ;;  %s1914_s22 = sand.u32 (!%p1875_p12), 1, %s1761_s16  }
  0x25   : > { %s1425_s21 = sshll.u32 (!%p1875_p12), %s1914_s22, 7  ;;  %s235_s25 = scalar_lea.sflag (!%p1875_p12), [#allocation4], %s1914_s22 }
  0x26   : > { %s1918_s29 = scalar_lea.vmem (!%p1875_p12), [#allocation3], %s1425_s21 }
  0x29   : > { %1740 = dma.done.wait (%p1858_p7), %s235_s25, 2048  }
  0x2a   : > { %1742 = vsyncadd (%p1858_p7), %s235_s25, 4294965248 }
  0x2b   : > { %1744 = dma.done.wait (%p1848_p3), [#allocation6], 128  }
  0x2c   : > { %1746 = vsyncadd (%p1848_p3), [#allocation6], 4294967168 }
  0x2d   : > { %1748 = dma.done.wait (%p1848_p3), [#allocation9], 16  }
  0x2e   : > { %1750 = vsyncadd (%p1848_p3), [#allocation9], 4294967280 }
  0x2f   : > { %254 = sfence }
  0x30   : > { %v797_v0 = vld [vmem:[%s2788_s2] sm:$0xff]  ;;  %s1447_s23 = sld [smem:[#allocation7 + $0x200]]  ;;  %v1941_v2 = vld [vmem:[%s1918_s29 + $0x8] sm:$0xff]  ;;  %v1944_v3 = vld [vmem:[%s1918_s29 + $0x10] sm:$0xff]  ;;  %vm335_vm0 = vcmask 64512   ;;  %vm1216_vm1 = vcmask 261120  }
  0x31   : > { %1538 = vmatpush.msra.mxu2 %v797_v0  ;;  %1539 = vmatpush.msra.mxu3 %v797_v0  ;;  %s1448_s26 = sld [smem:[#allocation7 + $0x201]]  ;;  %v1936_v1 = vld [vmem:[%s1918_s29] sm:$0xff]  ;;  %v1952_v5 = vld [vmem:[%s1918_s29 + $0x28] sm:$0xff]  ;;  %v1955_v6 = vld [vmem:[%s1918_s29 + $0x30] sm:$0xff] }
  0x32   : > { %s1449_s6 = sld [smem:[#allocation7 + $0x202]]  ;;  %909 = vmatpush.msra.mxu0 %v797_v0  ;;  %1118 = vmatpush.msra.mxu1 %v797_v0  ;;  %v1947_v4 = vld [vmem:[%s1918_s29 + $0x20] sm:$0xff]  ;;  %v1965_v9 = vld [vmem:[%s1918_s29 + $0x48] sm:$0xff]  ;;  %v1968_v10 = vld [vmem:[%s1918_s29 + $0x50] sm:$0xff] }
  0x33   : > { %s1450_s24 = sld [smem:[#allocation7 + $0x203]]  ;;  %v1958_v7 = vld [vmem:[%s1918_s29 + $0x40] sm:$0xff]  ;;  %v1986_v18 = vld [vmem:[%s1918_s29 + $0x68] sm:$0xff]  ;;  %v1991_v20 = vld [vmem:[%s1918_s29 + $0x70] sm:$0xff] }
  0x34   : > { %s1938_s10 = sld [smem:[#allocation8 + $0x4]]  ;;  %v1971_v11 = vld [vmem:[%s1918_s29 + $0x60] sm:$0xff]  ;;  %v2022_v50 = vld [vmem:[%s1918_s29 + $0x18] sm:$0xff] }
  0x35   : > { %s1949_s14 = sld [smem:[#allocation7]]  ;;  %v2031_v55 = vld [vmem:[%s1918_s29 + $0x38] sm:$0xff] }
  0x36   : > { %v1960_v8 = vstv %s1447_s23  ;;  %s1962_s30 = sld [smem:[#allocation7 + $0x1]]  ;;  %v2038_v60 = vld [vmem:[%s1918_s29 + $0x58] sm:$0xff] }
  0x37   : > { %v483_v12 = vmul.f32 %v1960_v8, %v1936_v1  ;;  %v1975_v13 = vstv %s1448_s26  ;;  %s1430_s7 = sld [smem:[#allocation7 + $0x2]]  ;;  %v484_v14 = vmul.f32 %v1960_v8, %v1941_v2  ;;  %v485_v15 = vmul.f32 %v1960_v8, %v1944_v3  ;;  %v2041_v61 = vld [vmem:[%s1918_s29 + $0x78] sm:$0xff] }
  0x38   : > { %v489_v16 = vmul.f32 %v1975_v13, %v1947_v4  ;;  %v1983_v17 = vstv %s1449_s6  ;;  %s1431_s8 = sld [smem:[#allocation7 + $0x3]]  ;;  %v490_v19 = vmul.f32 %v1975_v13, %v1952_v5  ;;  %v491_v21 = vmul.f32 %v1975_v13, %v1955_v6 }
  0x39   : > { %v499_v22 = vmul.f32 %v1983_v17, %v1958_v7  ;;  %v508_v23 = vstv %s1450_s24  ;;  %s329_s5 = sld [smem:[#allocation8]]  ;;  %v500_v24 = vmul.f32 %v1983_v17, %v1965_v9  ;;  %v501_v25 = vmul.f32 %v1983_v17, %v1968_v10 }
  0x3a   : > { %v493_v26 = vadd.f32 %v489_v16, %v483_v12  ;;  %v509_v27 = vmul.f32 %v508_v23, %v1971_v11  ;;  %v2003_v28 = vstv %s1938_s10  ;;  %v494_v29 = vadd.f32 %v490_v19, %v484_v14  ;;  %s2013_s11 = sld [smem:[#allocation7 + $0x280]] }
  0x3b   : > { %v294_v30 = vstv %s1949_s14  ;;  %v510_v31 = vmul.f32 %v508_v23, %v1986_v18  ;;  %v495_v32 = vadd.f32 %v491_v21, %v485_v15  ;;  %v511_v33 = vmul.f32 %v508_v23, %v1991_v20  ;;  %s2016_s12 = sld [smem:[#allocation7 + $0x281]] }
  0x3c   : > { %v503_v34 = vadd.f32 %v499_v22, %v493_v26  ;;  %v295_v35 = vmul.f32 %v294_v30, %v1936_v1  ;;  %v300_v36 = vstv %s1962_s30  ;;  %v504_v37 = vadd.f32 %v500_v24, %v494_v29  ;;  %s2024_s21 = sld [smem:[#allocation7 + $0x282]] }
  0x3d   : > { %v301_v38 = vmul.f32 %v300_v36, %v1947_v4  ;;  %v310_v39 = vstv %s1430_s7  ;;  %v296_v40 = vmul.f32 %v294_v30, %v1941_v2  ;;  %v302_v41 = vmul.f32 %v300_v36, %v1952_v5  ;;  %s2033_s25 = sld [smem:[#allocation7 + $0x283]] }
  0x3e   : > { %v513_v42 = vadd.f32 %v509_v27, %v503_v34  ;;  %v311_v43 = vmul.f32 %v310_v39, %v1958_v7  ;;  %v320_v44 = vstv %s1431_s8  ;;  %v514_v45 = vadd.f32 %v510_v31, %v504_v37  ;;  %s2043_s1 = sld [smem:[#allocation8 + $0x5]] }
  0x3f   : > { %v305_v46 = vadd.f32 %v301_v38, %v295_v35  ;;  %v321_v47 = vmul.f32 %v320_v44, %v1971_v11  ;;  %v2019_v48 = vstv %s329_s5  ;;  %v306_v49 = vadd.f32 %v302_v41, %v296_v40  ;;  %s2050_s3 = sld [smem:[#allocation7 + $0x80]] }
  0x40   : > { %v519_v51 = vadd.f32 %v2003_v28, %v513_v42  ;;  %v520_v52 = vadd.f32 %v2003_v28, %v514_v45  ;;  %v312_v53 = vmul.f32 %v310_v39, %v1965_v9  ;;  %v322_v54 = vmul.f32 %v320_v44, %v1986_v18  ;;  %s2055_s29 = sld [smem:[#allocation7 + $0x81]] }
  0x41   : > { %v315_v56 = vadd.f32 %v311_v43, %v305_v46  ;;  %v505_v57 = vadd.f32 %v501_v25, %v495_v32  ;;  %v297_v58 = vmul.f32 %v294_v30, %v1944_v3  ;;  %v303_v59 = vmul.f32 %v300_v36, %v1955_v6  ;;  %s2061_s23 = sld [smem:[#allocation7 + $0x82]] }
  0x42   : > { %524 = vst.msk [vmem:[#allocation2 + $0x80] sm:$0xff] %vm335_vm0, %v519_v51  ;;  %v316_v62 = vadd.f32 %v312_v53, %v306_v49  ;;  %v313_v63 = vmul.f32 %v310_v39, %v1968_v10  ;;  %v323_v0 = vmul.f32 %v320_v44, %v1991_v20  ;;  %v486_v12 = vmul.f32 %v1960_v8, %v2022_v50  ;;  %s2065_s26 = sld [smem:[#allocation7 + $0x83]] }
  0x43   : > { %v325_v14 = vadd.f32 %v321_v47, %v315_v56  ;;  %525 = vst.msk [vmem:[#allocation2 + $0x88] sm:$0xff] %vm335_vm0, %v520_v52  ;;  %v515_v15 = vadd.f32 %v511_v33, %v505_v57  ;;  %v307_v16 = vadd.f32 %v303_v59, %v297_v58  ;;  %v492_v19 = vmul.f32 %v1975_v13, %v2031_v55  ;;  %s2097_s6 = sld [smem:[#allocation8 + $0x1]] }
  0x44   : > { %v326_v21 = vadd.f32 %v322_v54, %v316_v62  ;;  %v502_v22 = vmul.f32 %v1983_v17, %v2038_v60  ;;  %v512_v24 = vmul.f32 %v508_v23, %v2041_v61  ;;  %v298_v8 = vmul.f32 %v294_v30, %v2022_v50  ;;  %s2162_s24 = sld [smem:[#allocation7 + $0x300]] }
  0x45   : > { %v331_v25 = vadd.f32 %v2019_v48, %v325_v14  ;;  %v521_v26 = vadd.f32 %v2003_v28, %v515_v15  ;;  %v317_v27 = vadd.f32 %v313_v63, %v307_v16  ;;  %v496_v13 = vadd.f32 %v492_v19, %v486_v12  ;;  %s2169_s10 = sld [smem:[#allocation7 + $0x301]] }
  0x46   : > { %v332_v29 = vadd.f32 %v2019_v48, %v326_v21  ;;  %v304_v17 = vmul.f32 %v300_v36, %v2031_v55  ;;  %v314_v23 = vmul.f32 %v310_v39, %v2038_v60  ;;  %v324_v31 = vmul.f32 %v320_v44, %v2041_v61  ;;  %s2177_s14 = sld [smem:[#allocation7 + $0x302]] }
  0x47   : > { %336 = vst.msk [vmem:[#allocation2] sm:$0xff] %vm335_vm0, %v331_v25  ;;  %v327_v30 = vadd.f32 %v323_v0, %v317_v27  ;;  %v506_v32 = vadd.f32 %v502_v22, %v496_v13  ;;  %v2073_v33 = vstv %s2013_s11  ;;  %v2076_v34 = vstv %s2016_s12  ;;  %s2196_s30 = sld [smem:[#allocation7 + $0x303]] }
  0x48   : > { %337 = vst.msk [vmem:[#allocation2 + $0x8] sm:$0xff] %vm335_vm0, %v332_v29  ;;  %v308_v35 = vadd.f32 %v304_v17, %v298_v8  ;;  %v530_v37 = vmul.f32 %v2073_v33, %v1936_v1  ;;  %v536_v36 = vmul.f32 %v2076_v34, %v1947_v4  ;;  %v2084_v38 = vstv %s2024_s21  ;;  %s2206_s7 = sld [smem:[#allocation8 + $0x6]] }
  0x49   : > { %v685_v39 = vld [vmem:[#allocation2 + $0x80] sm:$0xff]  ;;  %526 = vst.msk [vmem:[#allocation2 + $0x90] sm:$0xff] %vm335_vm0, %v521_v26  ;;  %v333_v40 = vadd.f32 %v2019_v48, %v327_v30  ;;  %v516_v41 = vadd.f32 %v512_v24, %v506_v32  ;;  %v546_v42 = vmul.f32 %v2084_v38, %v1958_v7  ;;  %v2091_v43 = vstv %s2033_s25  ;;  %s2214_s8 = sld [smem:[#allocation7 + $0x100]] }
  0x4a   : > { %v717_v44 = vpack.c.bf16 %v685_v39, %v685_v39  ;;  %v2093_v45 = vld [vmem:[#allocation2 + $0x88] sm:$0xff]  ;;  %v318_v46 = vadd.f32 %v314_v23, %v308_v35  ;;  %v540_v47 = vadd.f32 %v536_v36, %v530_v37  ;;  %v556_v49 = vmul.f32 %v2091_v43, %v1971_v11  ;;  %s2225_s5 = sld [smem:[#allocation7 + $0x101]] }
  0x4b   : > { %v718_v51 = vpack.c.bf16 %v2093_v45, %v2093_v45  ;;  %338 = vst.msk [vmem:[#allocation2 + $0x10] sm:$0xff] %vm335_vm0, %v333_v40  ;;  %v522_v52 = vadd.f32 %v2003_v28, %v516_v41  ;;  %v2104_v53 = vstv %s2050_s3  ;;  %v2110_v59 = vstv %s2043_s1  ;;  %s2239_s11 = sld [smem:[#allocation7 + $0x102]] }
  0x4c   : > { %v749_v54 = vunpack.c.l.bf16 %v717_v44  ;;  %v328_v56 = vadd.f32 %v324_v31, %v318_v46  ;;  %v550_v57 = vadd.f32 %v546_v42, %v540_v47  ;;  %v342_v58 = vmul.f32 %v2104_v53, %v1936_v1  ;;  %s2245_s12 = sld [smem:[#allocation7 + $0x103]] }
  0x4d   : > { %527 = vst.msk [vmem:[#allocation2 + $0x98] sm:$0xff] %vm335_vm0, %v522_v52  ;;  %v2113_v62 = vstv %s2055_s29  ;;  %v2116_v63 = vstv %s2061_s23  ;;  %v2119_v0 = vstv %s2065_s26  ;;  %v750_v8 = vunpack.c.l.bf16 %v718_v51  ;;  %s2286_s21 = sld [smem:[#allocation8 + $0x2]] }
  0x4e   : > { %v781_v12 = vsub.f32 %v685_v39, %v749_v54  ;;  %1515 = vmatmul.msk.f32.vlgmr.msra.gmra.mxu3 %vm335_vm0, %v749_v54  ;;  %v669_v28 = vld [vmem:[#allocation2] sm:$0xff]  ;;  %v334_v14 = vadd.f32 %v2019_v48, %v328_v56  ;;  %v560_v15 = vadd.f32 %v556_v49, %v550_v57  ;;  %v348_v16 = vmul.f32 %v2113_v62, %v1947_v4  ;;  %s2366_s25 = sld [smem:[#allocation7 + $0x380]] }
  0x4f   : > { %v701_v19 = vpack.c.bf16 %v669_v28, %v669_v28  ;;  %v2125_v21 = vld [vmem:[#allocation2 + $0x8] sm:$0xff]  ;;  %v358_v22 = vmul.f32 %v2116_v63, %v1958_v7  ;;  %v368_v24 = vmul.f32 %v2119_v0, %v1971_v11  ;;  %v531_v17 = vmul.f32 %v2073_v33, %v1941_v2  ;;  %s2371_s1 = sld [smem:[#allocation7 + $0x381]] }
  0x50   : > { %1483 = vmatmul.msk.f32.vlgmr.msra.gmra.mxu2 %vm335_vm0, %v781_v12  ;;  %v702_v48 = vpack.c.bf16 %v2125_v21, %v2125_v21  ;;  %v2134_v25 = vld [vmem:[#allocation2 + $0x90] sm:$0xff]  ;;  %339 = vst.msk [vmem:[#allocation2 + $0x18] sm:$0xff] %vm335_vm0, %v334_v14  ;;  %v566_v26 = vadd.f32 %v2110_v59, %v560_v15  ;;  %v352_v27 = vadd.f32 %v348_v16, %v342_v58  ;;  %v2148_v32 = vstv %s2097_s6  ;;  %s2376_s3 = sld [smem:[#allocation7 + $0x382]] }
  0x51   : > { %v733_v13 = vunpack.c.l.bf16 %v701_v19  ;;  %v719_v29 = vpack.c.bf16 %v2134_v25, %v2134_v25  ;;  %v537_v23 = vmul.f32 %v2076_v34, %v1952_v5  ;;  %v547_v35 = vmul.f32 %v2084_v38, %v1965_v9  ;;  %s2388_s29 = sld [smem:[#allocation7 + $0x383]] }
  0x52   : > { %v2144_v31 = vld [vmem:[#allocation2 + $0x10] sm:$0xff]  ;;  %571 = vst.msk [vmem:[#allocation2 + $0xa0] sm:$0xff] %vm335_vm0, %v566_v26  ;;  %v362_v30 = vadd.f32 %v358_v22, %v352_v27  ;;  %v557_v40 = vmul.f32 %v2091_v43, %v1986_v18  ;;  %v782_v41 = vsub.f32 %v2093_v45, %v750_v8  ;;  %v343_v44 = vmul.f32 %v2104_v53, %v1941_v2  ;;  %s2401_s23 = sld [smem:[#allocation7 + $0x180]] }
  0x53   : > { %v765_v37 = vsub.f32 %v669_v28, %v733_v13  ;;  %1499 = vmatmul.msk.f32.vlgmr.msra.gmra.mxu1 %vm335_vm0, %v733_v13  ;;  %v703_v36 = vpack.c.bf16 %v2144_v31, %v2144_v31  ;;  %v541_v39 = vadd.f32 %v537_v23, %v531_v17  ;;  %v349_v46 = vmul.f32 %v2113_v62, %v1952_v5  ;;  %s2411_s26 = sld [smem:[#allocation8 + $0x7]] }
  0x54   : > { %v372_v42 = vadd.f32 %v368_v24, %v362_v30  ;;  %v734_v47 = vunpack.c.l.bf16 %v702_v48  ;;  %v751_v49 = vunpack.c.l.bf16 %v719_v29  ;;  %v2167_v52 = vld [vmem:[#allocation2 + $0x98] sm:$0xff]  ;;  %v359_v57 = vmul.f32 %v2116_v63, %v1965_v9  ;;  %s2417_s6 = sld [smem:[#allocation7 + $0x181]] }
  0x55   : > { %1467 = vmatmul.msk.f32.vlgmr.msra.gmra.mxu0 %vm335_vm0, %v765_v37  ;;  %v2165_v51 = vunpack.c.l.bf16 %v703_v36  ;;  %v551_v54 = vadd.f32 %v547_v35, %v541_v39  ;;  %v353_v56 = vadd.f32 %v349_v46, %v343_v44  ;;  %v369_v58 = vmul.f32 %v2119_v0, %v1986_v18 }
  0x56   : > { %1516 = vmatmul.msk.f32.gmra.mxu3 %vm335_vm0, %v750_v8  ;;  %v378_v45 = vadd.f32 %v2148_v32, %v372_v42  ;;  %v532_v28 = vmul.f32 %v2073_v33, %v1944_v3  ;;  %v720_v14 = vpack.c.bf16 %v2167_v52, %v2167_v52  ;;  %v538_v16 = vmul.f32 %v2076_v34, %v1955_v6 }
  0x57   : > { %v561_v12 = vadd.f32 %v557_v40, %v551_v54  ;;  %v363_v15 = vadd.f32 %v359_v57, %v353_v56  ;;  %v766_v19 = vsub.f32 %v2125_v21, %v734_v47  ;;  %v783_v22 = vsub.f32 %v2134_v25, %v751_v49  ;;  %v2217_v35 = vld [vmem:[#allocation2 + $0x18] sm:$0xff] }
  0x58   : > { %1484 = vmatmul.msk.f32.gmra.mxu2 %vm335_vm0, %v782_v41  ;;  %383 = vst.msk [vmem:[#allocation2 + $0x20] sm:$0xff] %vm335_vm0, %v378_v45  ;;  %v548_v8 = vmul.f32 %v2084_v38, %v1968_v10  ;;  %v767_v48 = vsub.f32 %v2144_v31, %v2165_v51  ;;  %v542_v27 = vadd.f32 %v538_v16, %v532_v28  ;;  %v2208_v17 = vunpack.c.l.bf16 %v720_v14 }
  0x59   : > { %v567_v24 = vadd.f32 %v2110_v59, %v561_v12  ;;  %v373_v26 = vadd.f32 %v369_v58, %v363_v15  ;;  %v558_v13 = vmul.f32 %v2091_v43, %v1991_v20  ;;  %v344_v21 = vmul.f32 %v2104_v53, %v1944_v3  ;;  %v2228_v41 = vld [vmem:[#allocation2 + $0xa0] sm:$0xff] }
  0x5a   : > { %v350_v25 = vmul.f32 %v2113_v62, %v1955_v6  ;;  %v360_v29 = vmul.f32 %v2116_v63, %v1968_v10  ;;  %v552_v31 = vadd.f32 %v548_v8, %v542_v27  ;;  %v2212_v30 = vstv %s2162_s24  ;;  %s2430_s24 = sld [smem:[#allocation7 + $0x182]] }
  0x5b   : > { %1500 = vmatmul.msk.f32.gmra.mxu1 %vm335_vm0, %v734_v47  ;;  %572 = vst.msk [vmem:[#allocation2 + $0xa8] sm:$0xff] %vm335_vm0, %v567_v24  ;;  %v379_v23 = vadd.f32 %v2148_v32, %v373_v26  ;;  %v370_v36 = vmul.f32 %v2119_v0, %v1991_v20  ;;  %v533_v39 = vmul.f32 %v2073_v33, %v2022_v50  ;;  %v2234_v46 = vstv %s2169_s10  ;;  %s2439_s10 = sld [smem:[#allocation7 + $0x183]] }
  0x5c   : > { %v354_v37 = vadd.f32 %v350_v25, %v344_v21  ;;  %v539_v40 = vmul.f32 %v2076_v34, %v2031_v55  ;;  %v562_v42 = vadd.f32 %v558_v13, %v552_v31  ;;  %v549_v44 = vmul.f32 %v2084_v38, %v2038_v60 }
  0x5d   : > { %1468 = vmatmul.msk.f32.gmra.mxu0 %vm335_vm0, %v766_v19  ;;  %384 = vst.msk [vmem:[#allocation2 + $0x28] sm:$0xff] %vm335_vm0, %v379_v23  ;;  %v2237_v47 = vstv %s2177_s14  ;;  %v559_v54 = vmul.f32 %v2091_v43, %v2041_v61  ;;  %v704_v38 = vpack.c.bf16 %v2217_v35, %v2217_v35  ;;  %v351_v56 = vmul.f32 %v2113_v62, %v2031_v55  ;;  %s2470_s14 = sld [smem:[#allocation8 + $0x3]] }
  0x5e   : > { %1517 = vmatmul.msk.f32.gmra.mxu3 %vm335_vm0, %v751_v49  ;;  %v364_v33 = vadd.f32 %v360_v29, %v354_v37  ;;  %v543_v34 = vadd.f32 %v539_v40, %v533_v39  ;;  %v345_v49 = vmul.f32 %v2104_v53, %v2022_v50  ;;  %v568_v45 = vadd.f32 %v2110_v59, %v562_v42 }
  0x5f   : > { %v361_v57 = vmul.f32 %v2116_v63, %v2038_v60  ;;  %v721_v43 = vpack.c.bf16 %v2228_v41, %v2228_v41  ;;  %v577_v12 = vmul.f32 %v2212_v30, %v1936_v1  ;;  %v371_v14 = vmul.f32 %v2119_v0, %v2041_v61  ;;  %v2268_v15 = vld [vmem:[#allocation2 + $0x20] sm:$0xff] }
  0x60   : > { %1485 = vmatmul.msk.f32.gmra.mxu2 %vm335_vm0, %v783_v22  ;;  %v374_v53 = vadd.f32 %v370_v36, %v364_v33  ;;  %v553_v58 = vadd.f32 %v549_v44, %v543_v34  ;;  %573 = vst.msk [vmem:[#allocation2 + $0xb0] sm:$0xff] %vm335_vm0, %v568_v45  ;;  %v355_v28 = vadd.f32 %v351_v56, %v345_v49  ;;  %v2272_v22 = vstv %s2196_s30  ;;  %s1428_s30 = sshll.u32 %s1914_s22, 9 }
  0x61   : > { %v583_v62 = vmul.f32 %v2234_v46, %v1947_v4  ;;  %v593_v63 = vmul.f32 %v2237_v47, %v1958_v7  ;;  %v784_v0 = vsub.f32 %v2167_v52, %v2208_v17  ;;  %v603_v26 = vmul.f32 %v2272_v22, %v1971_v11 }
  0x62   : > { %v380_v16 = vadd.f32 %v2148_v32, %v374_v53  ;;  %v563_v19 = vadd.f32 %v559_v54, %v553_v58  ;;  %v365_v24 = vadd.f32 %v361_v57, %v355_v28  ;;  %v753_v27 = vunpack.c.l.bf16 %v721_v43  ;;  %v2279_v13 = vld [vmem:[#allocation2 + $0xa8] sm:$0xff] }
  0x63   : > { %1501 = vmatmul.msk.f32.gmra.mxu1 %vm335_vm0, %v2165_v51  ;;  %v587_v8 = vadd.f32 %v583_v62, %v577_v12  ;;  %v736_v51 = vunpack.c.l.bf16 %v704_v38  ;;  %v2284_v52 = vstv %s2214_s8  ;;  %v2296_v31 = vstv %s2206_s7  ;;  %s2617_s7 = scalar_lea.vmem [#allocation10], %s1428_s30  ;;  %s1537_s8 = sshll.u32 %s1769_s18, 9 }
  0x64   : > { %385 = vst.msk [vmem:[#allocation2 + $0x30] sm:$0xff] %vm335_vm0, %v380_v16  ;;  %v569_v21 = vadd.f32 %v2110_v59, %v563_v19  ;;  %v375_v25 = vadd.f32 %v371_v14, %v365_v24  ;;  %v389_v23 = vmul.f32 %v2284_v52, %v1936_v1  ;;  %v2299_v59 = vstv %s2225_s5  ;;  %v2310_v39 = vld [vmem:[#allocation2 + $0x28] sm:$0xff]  ;;  %s1298_s18 = sshll.u32 %s2617_s7, 4  ;;  %s1299_s18 = int_to_ptr.vmem [resolvable:$true] %s1298_s18 }
  0x65   : > { %1469 = vmatmul.msk.f32.gmra.mxu0 %vm335_vm0, %v767_v48  ;;  %v705_v48 = vpack.c.bf16 %v2268_v15, %v2268_v15  ;;  %v597_v29 = vadd.f32 %v593_v63, %v587_v8  ;;  %v2302_v37 = vstv %s2239_s11  ;;  %v2305_v36 = vstv %s2245_s12  ;;  %s1297_s12 = scalar_lea.hbm %s2790_s4, %s1537_s8 }
  0x66   : > { %1518 = vmatmul.msk.f32.gmra.mxu3 %vm335_vm0, %v2208_v17  ;;  %574 = vst.msk [vmem:[#allocation2 + $0xb8] sm:$0xff] %vm335_vm0, %v569_v21  ;;  %v722_v17 = vpack.c.bf16 %v2279_v13, %v2279_v13  ;;  %v381_v40 = vadd.f32 %v2148_v32, %v375_v25  ;;  %v395_v44 = vmul.f32 %v2299_v59, %v1947_v4  ;;  %v2345_v62 = vstv %s2286_s21  ;;  %s1300_s21 = sshll.u32 %s1297_s12, 4  ;;  %s1301_s21 = int_to_ptr.hbm [resolvable:$true] %s1300_s21 }
  0x67   : > { %v607_v42 = vadd.f32 %v603_v26, %v597_v29  ;;  %v768_v33 = vsub.f32 %v2217_v35, %v736_v51  ;;  %v785_v34 = vsub.f32 %v2228_v41, %v753_v27  ;;  %v405_v54 = vmul.f32 %v2302_v37, %v1958_v7  ;;  %v2336_v58 = vld [vmem:[#allocation2 + $0xb0] sm:$0xff] }
  0x68   : > { %1486 = vmatmul.msk.f32.gmra.mxu2 %vm335_vm0, %v784_v0  ;;  %v578_v49 = vmul.f32 %v2212_v30, %v1941_v2  ;;  %v737_v38 = vunpack.c.l.bf16 %v705_v48  ;;  %386 = vst.msk [vmem:[#allocation2 + $0x38] sm:$0xff] %vm335_vm0, %v381_v40  ;;  %v399_v45 = vadd.f32 %v395_v44, %v389_v23  ;;  %v415_v56 = vmul.f32 %v2305_v36, %v1971_v11 }
  0x69   : > { %v613_v32 = vadd.f32 %v2296_v31, %v607_v42  ;;  %v706_v35 = vpack.c.bf16 %v2310_v39, %v2310_v39  ;;  %v584_v41 = vmul.f32 %v2234_v46, %v1952_v5  ;;  %v594_v57 = vmul.f32 %v2237_v47, %v1965_v9 }
  0x6a   : > { %v390_v43 = vmul.f32 %v2284_v52, %v1941_v2  ;;  %v2334_v53 = vunpack.c.l.bf16 %v722_v17  ;;  %v409_v12 = vadd.f32 %v405_v54, %v399_v45  ;;  %v396_v28 = vmul.f32 %v2299_v59, %v1952_v5 }
  0x6b   : > { %1502 = vmatmul.msk.f32.gmra.mxu1 %vm335_vm0, %v736_v51  ;;  %618 = vst.msk [vmem:[#allocation2 + $0xc0] sm:$0xff] %vm335_vm0, %v613_v32  ;;  %v406_v14 = vmul.f32 %v2302_v37, %v1965_v9  ;;  %v588_v63 = vadd.f32 %v584_v41, %v578_v49  ;;  %v604_v16 = vmul.f32 %v2272_v22, %v1986_v18  ;;  %v2356_v51 = vunpack.c.l.bf16 %v706_v35  ;;  %v2383_v32 = vld [vmem:[#allocation2 + $0x30] sm:$0xff] }
  0x6c   : > { %v579_v19 = vmul.f32 %v2212_v30, %v1944_v3  ;;  %v419_v0 = vadd.f32 %v415_v56, %v409_v12  ;;  %v400_v24 = vadd.f32 %v396_v28, %v390_v43  ;;  %v416_v8 = vmul.f32 %v2305_v36, %v1986_v18 }
  0x6d   : > { %1470 = vmatmul.msk.f32.gmra.mxu0 %vm335_vm0, %v768_v33  ;;  %v585_v26 = vmul.f32 %v2234_v46, %v1955_v6  ;;  %v723_v21 = vpack.c.bf16 %v2336_v58, %v2336_v58  ;;  %v598_v48 = vadd.f32 %v594_v57, %v588_v63  ;;  %v595_v25 = vmul.f32 %v2237_v47, %v1968_v10 }
  0x6e   : > { %1519 = vmatmul.msk.f32.gmra.mxu3 %vm335_vm0, %v753_v27  ;;  %v425_v27 = vadd.f32 %v2345_v62, %v419_v0  ;;  %v410_v29 = vadd.f32 %v406_v14, %v400_v24  ;;  %v605_v17 = vmul.f32 %v2272_v22, %v1991_v20  ;;  %v769_v40 = vsub.f32 %v2268_v15, %v737_v38 }
  0x6f   : > { %v589_v23 = vadd.f32 %v585_v26, %v579_v19  ;;  %v608_v42 = vadd.f32 %v604_v16, %v598_v48  ;;  %v391_v44 = vmul.f32 %v2284_v52, %v1944_v3  ;;  %v397_v54 = vmul.f32 %v2299_v59, %v1955_v6 }
  0x70   : > { %1487 = vmatmul.msk.f32.gmra.mxu2 %vm335_vm0, %v785_v34  ;;  %430 = vst.msk [vmem:[#allocation2 + $0x40] sm:$0xff] %vm335_vm0, %v425_v27  ;;  %v420_v33 = vadd.f32 %v416_v8, %v410_v29  ;;  %v786_v15 = vsub.f32 %v2279_v13, %v2334_v53  ;;  %v770_v49 = vsub.f32 %v2310_v39, %v2356_v51  ;;  %v2390_v35 = vunpack.c.l.bf16 %v723_v21 }
  0x71   : > { %v599_v34 = vadd.f32 %v595_v25, %v589_v23  ;;  %v614_v45 = vadd.f32 %v2296_v31, %v608_v42  ;;  %v407_v56 = vmul.f32 %v2302_v37, %v1968_v10  ;;  %v417_v13 = vmul.f32 %v2305_v36, %v1991_v20 }
  0x72   : > { %v426_v41 = vadd.f32 %v2345_v62, %v420_v33  ;;  %v401_v39 = vadd.f32 %v397_v54, %v391_v44  ;;  %v580_v57 = vmul.f32 %v2212_v30, %v2022_v50  ;;  %v586_v43 = vmul.f32 %v2234_v46, %v2031_v55  ;;  %v2468_v33 = vld [vmem:[#allocation2 + $0x38] sm:$0xff] }
  0x73   : > { %1503 = vmatmul.msk.f32.gmra.mxu1 %vm335_vm0, %v737_v38  ;;  %v609_v38 = vadd.f32 %v605_v17, %v599_v34  ;;  %619 = vst.msk [vmem:[#allocation2 + $0xc8] sm:$0xff] %vm335_vm0, %v614_v45  ;;  %v707_v12 = vpack.c.bf16 %v2383_v32, %v2383_v32  ;;  %v596_v14 = vmul.f32 %v2237_v47, %v2038_v60  ;;  %v2437_v8 = vstv %s2371_s1  ;;  %s1701_s1 = sshra.s32 %s1301_s21, 4  ;;  %s1702_s1 = int_to_ptr.hbm [resolvable:$true] %s1701_s1 }
  0x74   : > { %431 = vst.msk [vmem:[#allocation2 + $0x48] sm:$0xff] %vm335_vm0, %v426_v41  ;;  %v411_v30 = vadd.f32 %v407_v56, %v401_v39  ;;  %v590_v46 = vadd.f32 %v586_v43, %v580_v57  ;;  %v606_v63 = vmul.f32 %v2272_v22, %v2041_v61  ;;  %v787_v16 = vsub.f32 %v2336_v58, %v2390_v35  ;;  %p1708_p11 = scmp.lt.s32.totalorder %s1702_s1, %s2790_s4 }
  0x75   : > { %1471 = vmatmul.msk.f32.gmra.mxu0 %vm335_vm0, %v769_v40  ;;  %v615_v28 = vadd.f32 %v2296_v31, %v609_v38  ;;  %v398_v47 = vmul.f32 %v2299_v59, %v2031_v55  ;;  %v408_v19 = vmul.f32 %v2302_v37, %v2038_v60  ;;  %v2428_v22 = vstv %s2366_s25  ;;  %s1282_s25 = scalar_lea.sflag [#allocation5], %s1914_s22 }
  0x76   : > { %1520 = vmatmul.msk.f32.gmra.mxu3 %vm335_vm0, %v2334_v53  ;;  %v392_v53 = vmul.f32 %v2284_v52, %v2022_v50  ;;  %v2432_v52 = vld [vmem:[#allocation2 + $0xb8] sm:$0xff]  ;;  %v421_v0 = vadd.f32 %v417_v13, %v411_v30  ;;  %v600_v24 = vadd.f32 %v596_v14, %v590_v46  ;;  %v624_v58 = vmul.f32 %v2428_v22, %v1936_v1 }
  0x77   : > { %620 = vst.msk [vmem:[#allocation2 + $0xd0] sm:$0xff] %vm335_vm0, %v615_v28  ;;  %v739_v59 = vunpack.c.l.bf16 %v707_v12  ;;  %v418_v37 = vmul.f32 %v2305_v36, %v2041_v61  ;;  %v630_v21 = vmul.f32 %v2437_v8, %v1947_v4  ;;  %v2449_v27 = vstv %s2376_s3  ;;  %v2510_v46 = vld [vmem:[#allocation2 + $0x40] sm:$0xff]  ;;  %s1703_s3 = scalar_lea.hbm %s1702_s1, 512 }
  0x78   : > { %1488 = vmatmul.msk.f32.gmra.mxu2 %vm335_vm0, %v786_v15  ;;  %v402_v26 = vadd.f32 %v398_v47, %v392_v53  ;;  %v427_v48 = vadd.f32 %v2345_v62, %v421_v0  ;;  %v610_v25 = vadd.f32 %v606_v63, %v600_v24  ;;  %v2452_v29 = vstv %s2388_s29  ;;  %v2472_v15 = vld [vmem:[#allocation2 + $0xc0] sm:$0xff]  ;;  %p1704_p3 = scmp.ne.s32.totalorder %s1702_s1, %s1703_s3 }
  0x79   : > { %v724_v23 = vpack.c.bf16 %v2432_v52, %v2432_v52  ;;  %v634_v40 = vadd.f32 %v630_v21, %v624_v58  ;;  %v640_v36 = vmul.f32 %v2449_v27, %v1958_v7  ;;  %v650_v42 = vmul.f32 %v2452_v29, %v1971_v11 }
  0x7a   : > { %v412_v17 = vadd.f32 %v408_v19, %v402_v26  ;;  %432 = vst.msk [vmem:[#allocation2 + $0x50] sm:$0xff] %vm335_vm0, %v427_v48  ;;  %v2464_v44 = vstv %s2401_s23  ;;  %v2481_v45 = vstv %s2417_s6  ;;  %v771_v56 = vsub.f32 %v2383_v32, %v739_v59  ;;  %v694_v48 = vld [vmem:[#allocation2 + $0xc8] sm:$0xff]  ;;  %p1705_p7 = pnand %p1704_p3, %p1862_p8 }
  0x7b   : > { %1504 = vmatmul.msk.f32.gmra.mxu1 %vm335_vm0, %v2356_v51  ;;  %v616_v51 = vadd.f32 %v2296_v31, %v610_v25  ;;  %v644_v54 = vadd.f32 %v640_v36, %v634_v40  ;;  %v2476_v31 = vstv %s2411_s26  ;;  %v708_v13 = vpack.c.bf16 %v2468_v33, %v2468_v33  ;;  %s1707_s26 = scalar_lea.hbm %s2790_s4, 1024 }
  0x7c   : > { %v422_v34 = vadd.f32 %v418_v37, %v412_v17  ;;  %v442_v39 = vmul.f32 %v2481_v45, %v1947_v4  ;;  %v2491_v57 = vstv %s2430_s24  ;;  %v2494_v43 = vstv %s2439_s10  ;;  %p1706_p10 = pneg %p1705_p7  ;;  %p1709_p12 = scmp.lt.s32.totalorder %s1707_s26, %s1703_s3 }
  0x7d   : > { %1472 = vmatmul.msk.f32.gmra.mxu0 %vm335_vm0, %v770_v49  ;;  %621 = vst.msk [vmem:[#allocation2 + $0xd8] sm:$0xff] %vm335_vm0, %v616_v51  ;;  %v436_v49 = vmul.f32 %v2464_v44, %v1936_v1  ;;  %v654_v38 = vadd.f32 %v650_v42, %v644_v54  ;;  %v725_v1 = vpack.c.bf16 %v2472_v15, %v2472_v15  ;;  %v740_v63 = vunpack.c.l.bf16 %v708_v13 }
  0x7e   : > { %1521 = vmatmul.msk.f32.gmra.mxu3 %vm335_vm0, %v2390_v35  ;;  %v756_v35 = vunpack.c.l.bf16 %v724_v23  ;;  %v428_v41 = vadd.f32 %v2345_v62, %v422_v34  ;;  %v452_v62 = vmul.f32 %v2491_v57, %v1958_v7  ;;  %v462_v4 = vmul.f32 %v2494_v43, %v1971_v11  ;;  %p1710_p0 = por %p1709_p12, %p1708_p11 }
  0x7f   : > { %v660_v32 = vadd.f32 %v2476_v31, %v654_v38  ;;  %v446_v12 = vadd.f32 %v442_v39, %v436_v49  ;;  %v625_v28 = vmul.f32 %v2428_v22, %v1941_v2  ;;  %v631_v14 = vmul.f32 %v2437_v8, %v1952_v5 }
  0x80   : > { %1489 = vmatmul.msk.f32.gmra.mxu2 %vm335_vm0, %v787_v16  ;;  %433 = vst.msk [vmem:[#allocation2 + $0x58] sm:$0xff] %vm335_vm0, %v428_v41  ;;  %v788_v30 = vsub.f32 %v2432_v52, %v756_v35  ;;  %v641_v7 = vmul.f32 %v2449_v27, %v1965_v9  ;;  %v651_v16 = vmul.f32 %v2452_v29, %v1986_v18  ;;  %v2520_v47 = vstv %s2470_s14  ;;  %p1711_p1 = pnand %p1710_p0, %p1706_p10 }
  0x81   : > { %665 = vst.msk [vmem:[#allocation2 + $0xe0] sm:$0xff] %vm335_vm0, %v660_v32  ;;  %v456_v53 = vadd.f32 %v452_v62, %v446_v12  ;;  %v635_v11 = vadd.f32 %v631_v14, %v625_v28  ;;  %v437_v19 = vmul.f32 %v2464_v44, %v1941_v2  ;;  %v443_v52 = vmul.f32 %v2481_v45, %v1952_v5  ;;  %v695_v12 = vld [vmem:[#allocation2 + $0xd0] sm:$0xff] }
  0x82   : > { %v757_v0 = vunpack.c.l.bf16 %v725_v1  ;;  %v709_v24 = vpack.c.bf16 %v2510_v46, %v2510_v46  ;;  %v453_v37 = vmul.f32 %v2491_v57, %v1965_v9  ;;  %v626_v21 = vmul.f32 %v2428_v22, %v1944_v3 }
  0x83   : > { %1505 = vmatmul.msk.f32.gmra.mxu1 %vm335_vm0, %v739_v59  ;;  %v466_v58 = vadd.f32 %v462_v4, %v456_v53  ;;  %v645_v59 = vadd.f32 %v641_v7, %v635_v11  ;;  %v447_v26 = vadd.f32 %v443_v52, %v437_v19  ;;  %v632_v2 = vmul.f32 %v2437_v8, %v1955_v6 }
  0x84   : > { %v772_v5 = vsub.f32 %v2468_v33, %v740_v63  ;;  %v463_v40 = vmul.f32 %v2494_v43, %v1986_v18  ;;  %v789_v9 = vsub.f32 %v2472_v15, %v757_v0  ;;  %v642_v42 = vmul.f32 %v2449_v27, %v1968_v10  ;;  %v678_v15 = vld [vmem:[#allocation2 + $0x48] sm:$0xff] }
  0x85   : > { %1473 = vmatmul.msk.f32.gmra.mxu0 %vm335_vm0, %v771_v56  ;;  %v472_v25 = vadd.f32 %v2520_v47, %v466_v58  ;;  %v655_v23 = vadd.f32 %v651_v16, %v645_v59  ;;  %v457_v17 = vadd.f32 %v453_v37, %v447_v26  ;;  %v636_v36 = vadd.f32 %v632_v2, %v626_v21  ;;  %v696_v59 = vld [vmem:[#allocation2 + $0xd8] sm:$0xff] }
  0x86   : > { %1522 = vmatmul.msk.f32.gmra.mxu3 %vm335_vm0, %v756_v35  ;;  %v741_v33 = vunpack.c.l.bf16 %v709_v24  ;;  %v726_v34 = vpack.c.bf16 %v694_v48, %v694_v48  ;;  %v652_v49 = vmul.f32 %v2452_v29, %v1991_v20  ;;  %v438_v35 = vmul.f32 %v2464_v44, %v1944_v3 }
  0x87   : > { %477 = vst.msk [vmem:[#allocation2 + $0x60] sm:$0xff] %vm335_vm0, %v472_v25  ;;  %v661_v51 = vadd.f32 %v2476_v31, %v655_v23  ;;  %v467_v54 = vadd.f32 %v463_v40, %v457_v17  ;;  %v646_v18 = vadd.f32 %v642_v42, %v636_v36  ;;  %v444_v38 = vmul.f32 %v2481_v45, %v1955_v6 }
  0x88   : > { %1490 = vmatmul.msk.f32.gmra.mxu2 %vm335_vm0, %v788_v30  ;;  %v773_v13 = vsub.f32 %v2510_v46, %v741_v33  ;;  %v758_v39 = vunpack.c.l.bf16 %v726_v34  ;;  %v454_v1 = vmul.f32 %v2491_v57, %v1968_v10  ;;  %v627_v32 = vmul.f32 %v2428_v22, %v2022_v50  ;;  %v697_v2 = vld [vmem:[#allocation2 + $0xe0] sm:$0xff] }
  0x89   : > { %666 = vst.msk [vmem:[#allocation2 + $0xe8] sm:$0xff] %vm335_vm0, %v661_v51  ;;  %v473_v56 = vadd.f32 %v2520_v47, %v467_v54  ;;  %v656_v41 = vadd.f32 %v652_v49, %v646_v18  ;;  %v710_v62 = vpack.c.bf16 %v678_v15, %v678_v15  ;;  %v448_v4 = vadd.f32 %v444_v38, %v438_v35 }
  0x8a   : > { %v633_v6 = vmul.f32 %v2437_v8, %v2031_v55  ;;  %v464_v28 = vmul.f32 %v2494_v43, %v1991_v20  ;;  %v643_v14 = vmul.f32 %v2449_v27, %v2038_v60  ;;  %v790_v30 = vsub.f32 %v694_v48, %v758_v39  ;;  %v679_v20 = vld [vmem:[#allocation2 + $0x50] sm:$0xff] }
  0x8b   : > { %1506 = vmatmul.msk.f32.gmra.mxu1 %vm335_vm0, %v740_v63  ;;  %478 = vst.msk [vmem:[#allocation2 + $0x68] sm:$0xff] %vm335_vm0, %v473_v56  ;;  %v662_v3 = vadd.f32 %v2476_v31, %v656_v41  ;;  %v458_v10 = vadd.f32 %v454_v1, %v448_v4  ;;  %v727_v46 = vpack.c.bf16 %v695_v12, %v695_v12  ;;  %v742_v8 = vunpack.c.l.bf16 %v710_v62 }
  0x8c   : > { %v637_v22 = vadd.f32 %v633_v6, %v627_v32  ;;  %v653_v7 = vmul.f32 %v2452_v29, %v2041_v61  ;;  %v439_v27 = vmul.f32 %v2464_v44, %v2022_v50  ;;  %v445_v11 = vmul.f32 %v2481_v45, %v2031_v55 }
  0x8d   : > { %1474 = vmatmul.msk.f32.gmra.mxu0 %vm335_vm0, %v772_v5  ;;  %667 = vst.msk [vmem:[#allocation2 + $0xf0] sm:$0xff] %vm335_vm0, %v662_v3  ;;  %v468_v63 = vadd.f32 %v464_v28, %v458_v10  ;;  %v759_v29 = vunpack.c.l.bf16 %v727_v46  ;;  %v774_v24 = vsub.f32 %v678_v15, %v742_v8  ;;  %v711_v58 = vpack.c.bf16 %v679_v20, %v679_v20 }
  0x8e   : > { %1523 = vmatmul.msk.f32.gmra.mxu3 %vm335_vm0, %v757_v0  ;;  %v647_v53 = vadd.f32 %v643_v14, %v637_v22  ;;  %v449_v52 = vadd.f32 %v445_v11, %v439_v27  ;;  %v455_v0 = vmul.f32 %v2491_v57, %v2038_v60  ;;  %v465_v55 = vmul.f32 %v2494_v43, %v2041_v61  ;;  %v680_v57 = vld [vmem:[#allocation2 + $0x58] sm:$0xff]  ;;  %v681_v23 = vld [vmem:[#allocation2 + $0x60] sm:$0xff] }
  0x8f   : > { %v474_v16 = vadd.f32 %v2520_v47, %v468_v63  ;;  %v791_v45 = vsub.f32 %v695_v12, %v759_v29  ;;  %v728_v26 = vpack.c.bf16 %v696_v59, %v696_v59  ;;  %v743_v60 = vunpack.c.l.bf16 %v711_v58 }
  0x90   : > { %1491 = vmatmul.msk.f32.gmra.mxu2 %vm335_vm0, %v789_v9  ;;  %v657_v19 = vadd.f32 %v653_v7, %v647_v53  ;;  %v459_v44 = vadd.f32 %v455_v0, %v449_v52  ;;  %v712_v43 = vpack.c.bf16 %v680_v57, %v680_v57  ;;  %v729_v48 = vpack.c.bf16 %v697_v2, %v697_v2  ;;  %v698_v36 = vld [vmem:[#allocation2 + $0xe8] sm:$0xff] }
  0x91   : > { %479 = vst.msk [vmem:[#allocation2 + $0x70] sm:$0xff] %vm335_vm0, %v474_v16  ;;  %v775_v61 = vsub.f32 %v679_v20, %v743_v60  ;;  %v713_v40 = vpack.c.bf16 %v681_v23, %v681_v23  ;;  %v730_v51 = vpack.c.bf16 %v698_v36, %v698_v36 }
  0x92   : > { %v663_v50 = vadd.f32 %v2476_v31, %v657_v19  ;;  %v469_v37 = vadd.f32 %v465_v55, %v459_v44  ;;  %v760_v31 = vunpack.c.l.bf16 %v728_v26  ;;  %v744_v25 = vunpack.c.l.bf16 %v712_v43 }
  0x93   : > { %1507 = vmatmul.msk.f32.gmra.mxu1 %vm335_vm0, %v741_v33  ;;  %v745_v42 = vunpack.c.l.bf16 %v713_v40  ;;  %v682_v33 = vld [vmem:[#allocation2 + $0x68] sm:$0xff]  ;;  %v762_v34 = vunpack.c.l.bf16 %v730_v51 }
  0x94   : > { %668 = vst.msk [vmem:[#allocation2 + $0xf8] sm:$0xff] %vm335_vm0, %v663_v50  ;;  %v475_v21 = vadd.f32 %v2520_v47, %v469_v37  ;;  %v792_v5 = vsub.f32 %v696_v59, %v760_v31  ;;  %v761_v47 = vunpack.c.l.bf16 %v729_v48  ;;  %v776_v17 = vsub.f32 %v680_v57, %v744_v25  ;;  %v699_v18 = vld [vmem:[#allocation2 + $0xf0] sm:$0xff] }
  0x95   : > { %1475 = vmatmul.msk.f32.gmra.mxu0 %vm335_vm0, %v773_v13  ;;  %v777_v54 = vsub.f32 %v681_v23, %v745_v42  ;;  %v714_v49 = vpack.c.bf16 %v682_v33, %v682_v33  ;;  %v794_v15 = vsub.f32 %v698_v36, %v762_v34  ;;  %v731_v56 = vpack.c.bf16 %v699_v18, %v699_v18 }
  0x96   : > { %1524 = vmatmul.msk.f32.gmra.mxu3 %vm335_vm0, %v758_v39  ;;  %480 = vst.msk [vmem:[#allocation2 + $0x78] sm:$0xff] %vm335_vm0, %v475_v21  ;;  %v793_v9 = vsub.f32 %v697_v2, %v761_v47 }
  0x97   : > { %v746_v35 = vunpack.c.l.bf16 %v714_v49  ;;  %v763_v38 = vunpack.c.l.bf16 %v731_v56 }
  0x98   : > { %1492 = vmatmul.msk.f32.gmra.mxu2 %vm335_vm0, %v790_v30  ;;  %v683_v41 = vld [vmem:[#allocation2 + $0x70] sm:$0xff] }
  0x99   : > { %v778_v13 = vsub.f32 %v682_v33, %v746_v35  ;;  %v715_v39 = vpack.c.bf16 %v683_v41, %v683_v41  ;;  %v795_v32 = vsub.f32 %v699_v18, %v763_v38 }
  0x9b   : > { %1508 = vmatmul.msk.f32.gmra.mxu1 %vm335_vm0, %v742_v8  ;;  %v700_v1 = vld [vmem:[#allocation2 + $0xf8] sm:$0xff]  ;;  %v747_v12 = vunpack.c.l.bf16 %v715_v39 }
  0x9c   : > { %v732_v62 = vpack.c.bf16 %v700_v1, %v700_v1 }
  0x9d   : > { %1476 = vmatmul.msk.f32.gmra.mxu0 %vm335_vm0, %v774_v24  ;;  %v684_v3 = vld [vmem:[#allocation2 + $0x78] sm:$0xff]  ;;  %v779_v6 = vsub.f32 %v683_v41, %v747_v12 }
  0x9e   : > { %1525 = vmatmul.msk.f32.gmra.mxu3 %vm335_vm0, %v759_v29  ;;  %v764_v4 = vunpack.c.l.bf16 %v732_v62  ;;  %v716_v28 = vpack.c.bf16 %v684_v3, %v684_v3 }
  0xa0   : > { %1493 = vmatmul.msk.f32.gmra.mxu2 %vm335_vm0, %v791_v45  ;;  %v796_v14 = vsub.f32 %v700_v1, %v764_v4  ;;  %v748_v10 = vunpack.c.l.bf16 %v716_v28 }
  0xa2   : > { %v780_v22 = vsub.f32 %v684_v3, %v748_v10 }
  0xa3   : > { %1509 = vmatmul.msk.f32.gmra.mxu1 %vm335_vm0, %v743_v60 }
  0xa5   : > { %1477 = vmatmul.msk.f32.gmra.mxu0 %vm335_vm0, %v775_v61 }
  0xa6   : > { %1526 = vmatmul.msk.f32.gmra.mxu3 %vm335_vm0, %v760_v31 }
  0xa8   : > { %1494 = vmatmul.msk.f32.gmra.mxu2 %vm335_vm0, %v792_v5 }
  0xab   : > { %1510 = vmatmul.msk.f32.gmra.mxu1 %vm335_vm0, %v744_v25 }
  0xad   : > { %1478 = vmatmul.msk.f32.gmra.mxu0 %vm335_vm0, %v776_v17 }
  0xae   : > { %1527 = vmatmul.msk.f32.gmra.mxu3 %vm335_vm0, %v761_v47 }
  0xb0   : > { %1495 = vmatmul.msk.f32.gmra.mxu2 %vm335_vm0, %v793_v9 }
  0xb3   : > { %1511 = vmatmul.msk.f32.gmra.mxu1 %vm335_vm0, %v745_v42 }
  0xb5   : > { %1479 = vmatmul.msk.f32.gmra.mxu0 %vm335_vm0, %v777_v54 }
  0xb6   : > { %1528 = vmatmul.msk.f32.gmra.mxu3 %vm335_vm0, %v762_v34 }
  0xb8   : > { %1496 = vmatmul.msk.f32.gmra.mxu2 %vm335_vm0, %v794_v15 }
  0xbb   : > { %1512 = vmatmul.msk.f32.gmra.mxu1 %vm335_vm0, %v746_v35 }
  0xbd   : > { %1480 = vmatmul.msk.f32.gmra.mxu0 %vm335_vm0, %v778_v13 }
  0xbe   : > { %1529 = vmatmul.msk.f32.gmra.mxu3 %vm335_vm0, %v763_v38 }
  0xc0   : > { %1497 = vmatmul.msk.f32.gmra.mxu2 %vm335_vm0, %v795_v32 }
  0xc3   : > { %1513 = vmatmul.msk.f32.gmra.mxu1 %vm335_vm0, %v747_v12 }
  0xc5   : > { %1481 = vmatmul.msk.f32.gmra.mxu0 %vm335_vm0, %v779_v6 }
  0xc6   : > { %1530 = vmatmul.msk.f32.gmra.mxu3 %vm335_vm0, %v764_v4 }
  0xc8   : > { %1498 = vmatmul.msk.f32.gmra.mxu2 %vm335_vm0, %v796_v14 }
  0xcb   : > { %1514 = vmatmul.msk.f32.gmra.mxu1 %vm335_vm0, %v748_v10 }
  0xcd   : > { %1482 = vmatmul.msk.f32.gmra.mxu0 %vm335_vm0, %v780_v22 }
  0xd0   : > { %v1120_v30 = vpop.f32.mrf.mxu1 }
  0xd1   : > { %v1168_v46 = vpop.f32.mrf.mxu3 }
  0xd2   : > { %v911_v7 = vpop.f32.mrf.mxu0 }
  0xd3   : > { %v959_v8 = vpop.f32.mrf.mxu2  ;;  %v1121_v63 = vadd.f32 %v1120_v30, %v911_v7 }
  0xd4   : > { %v1169_v53 = vadd.f32 %v1168_v46, %v959_v8 }
  0xd5   : > { %1217 = vst.msk [vmem:[%s2617_s7] sm:$0xff] %vm1216_vm1, %v1121_v63 }
  0xd6   : > { %1218 = vst.msk [vmem:[%s2617_s7 + $0x8] sm:$0xff] %vm1216_vm1, %v1121_v63 }
  0xd7   : > { %1249 = vst.msk [vmem:[%s2617_s7 + $0x100] sm:$0xff] %vm1216_vm1, %v1169_v53 }
  0xd8   : > { %1250 = vst.msk [vmem:[%s2617_s7 + $0x108] sm:$0xff] %vm1216_vm1, %v1169_v53  ;;  %v1123_v20 = vpop.f32.mrf.mxu1 }
  0xd9   : > { %v1171_v27 = vpop.f32.mrf.mxu3 }
  0xda   : > { %v914_v11 = vpop.f32.mrf.mxu0 }
  0xdb   : > { %v962_v16 = vpop.f32.mrf.mxu2  ;;  %v1124_v19 = vadd.f32 %v1123_v20, %v914_v11 }
  0xdc   : > { %v1172_v29 = vadd.f32 %v1171_v27, %v962_v16 }
  0xdd   : > { %1219 = vst.msk [vmem:[%s2617_s7 + $0x10] sm:$0xff] %vm1216_vm1, %v1124_v19 }
  0xde   : > { %1220 = vst.msk [vmem:[%s2617_s7 + $0x18] sm:$0xff] %vm1216_vm1, %v1124_v19 }
  0xdf   : > { %1251 = vst.msk [vmem:[%s2617_s7 + $0x110] sm:$0xff] %vm1216_vm1, %v1172_v29 }
  0xe0   : > { %1252 = vst.msk [vmem:[%s2617_s7 + $0x118] sm:$0xff] %vm1216_vm1, %v1172_v29  ;;  %v1126_v52 = vpop.f32.mrf.mxu1 }
  0xe1   : > { %v1174_v0 = vpop.f32.mrf.mxu3 }
  0xe2   : > { %v917_v24 = vpop.f32.mrf.mxu0 }
  0xe3   : > { %v965_v58 = vpop.f32.mrf.mxu2  ;;  %v1127_v59 = vadd.f32 %v1126_v52, %v917_v24 }
  0xe4   : > { %v1175_v50 = vadd.f32 %v1174_v0, %v965_v58 }
  0xe5   : > { %1221 = vst.msk [vmem:[%s2617_s7 + $0x20] sm:$0xff] %vm1216_vm1, %v1127_v59 }
  0xe6   : > { %1222 = vst.msk [vmem:[%s2617_s7 + $0x28] sm:$0xff] %vm1216_vm1, %v1127_v59 }
  0xe7   : > { %1253 = vst.msk [vmem:[%s2617_s7 + $0x120] sm:$0xff] %vm1216_vm1, %v1175_v50 }
  0xe8   : > { %1254 = vst.msk [vmem:[%s2617_s7 + $0x128] sm:$0xff] %vm1216_vm1, %v1175_v50  ;;  %v1129_v44 = vpop.f32.mrf.mxu1 }
  0xe9   : > { %v1177_v55 = vpop.f32.mrf.mxu3 }
  0xea   : > { %v920_v45 = vpop.f32.mrf.mxu0 }
  0xeb   : > { %v968_v26 = vpop.f32.mrf.mxu2  ;;  %v1130_v37 = vadd.f32 %v1129_v44, %v920_v45 }
  0xec   : > { %v1178_v60 = vadd.f32 %v1177_v55, %v968_v26 }
  0xed   : > { %1223 = vst.msk [vmem:[%s2617_s7 + $0x30] sm:$0xff] %vm1216_vm1, %v1130_v37 }
  0xee   : > { %1224 = vst.msk [vmem:[%s2617_s7 + $0x38] sm:$0xff] %vm1216_vm1, %v1130_v37 }
  0xef   : > { %1255 = vst.msk [vmem:[%s2617_s7 + $0x130] sm:$0xff] %vm1216_vm1, %v1178_v60 }
  0xf0   : > { %1256 = vst.msk [vmem:[%s2617_s7 + $0x138] sm:$0xff] %vm1216_vm1, %v1178_v60  ;;  %v1132_v57 = vpop.f32.mrf.mxu1 }
  0xf1   : > { %v1180_v21 = vpop.f32.mrf.mxu3 }
  0xf2   : > { %v923_v31 = vpop.f32.mrf.mxu0 }
  0xf3   : > { %v971_v61 = vpop.f32.mrf.mxu2  ;;  %v1133_v43 = vadd.f32 %v1132_v57, %v923_v31 }
  0xf4   : > { %v1181_v2 = vadd.f32 %v1180_v21, %v971_v61 }
  0xf5   : > { %1225 = vst.msk [vmem:[%s2617_s7 + $0x40] sm:$0xff] %vm1216_vm1, %v1133_v43 }
  0xf6   : > { %1226 = vst.msk [vmem:[%s2617_s7 + $0x48] sm:$0xff] %vm1216_vm1, %v1133_v43 }
  0xf7   : > { %1257 = vst.msk [vmem:[%s2617_s7 + $0x140] sm:$0xff] %vm1216_vm1, %v1181_v2 }
  0xf8   : > { %1258 = vst.msk [vmem:[%s2617_s7 + $0x148] sm:$0xff] %vm1216_vm1, %v1181_v2  ;;  %v1135_v5 = vpop.f32.mrf.mxu1 }
  0xf9   : > { %v1183_v48 = vpop.f32.mrf.mxu3 }
  0xfa   : > { %v926_v25 = vpop.f32.mrf.mxu0 }
  0xfb   : > { %v974_v23 = vpop.f32.mrf.mxu2  ;;  %v1136_v47 = vadd.f32 %v1135_v5, %v926_v25 }
  0xfc   : > { %v1184_v17 = vadd.f32 %v1183_v48, %v974_v23 }
  0xfd   : > { %1227 = vst.msk [vmem:[%s2617_s7 + $0x50] sm:$0xff] %vm1216_vm1, %v1136_v47 }
  0xfe   : > { %1228 = vst.msk [vmem:[%s2617_s7 + $0x58] sm:$0xff] %vm1216_vm1, %v1136_v47 }
  0xff   : > { %1259 = vst.msk [vmem:[%s2617_s7 + $0x150] sm:$0xff] %vm1216_vm1, %v1184_v17 }
 0x100   : > { %1260 = vst.msk [vmem:[%s2617_s7 + $0x158] sm:$0xff] %vm1216_vm1, %v1184_v17  ;;  %v1138_v40 = vpop.f32.mrf.mxu1 }
 0x101   : > { %v1186_v36 = vpop.f32.mrf.mxu3 }
 0x102   : > { %v929_v9 = vpop.f32.mrf.mxu0 }
 0x103   : > { %v977_v51 = vpop.f32.mrf.mxu2  ;;  %v1139_v42 = vadd.f32 %v1138_v40, %v929_v9 }
 0x104   : > { %v1187_v33 = vadd.f32 %v1186_v36, %v977_v51 }
 0x105   : > { %1229 = vst.msk [vmem:[%s2617_s7 + $0x60] sm:$0xff] %vm1216_vm1, %v1139_v42 }
 0x106   : > { %1230 = vst.msk [vmem:[%s2617_s7 + $0x68] sm:$0xff] %vm1216_vm1, %v1139_v42 }
 0x107   : > { %1261 = vst.msk [vmem:[%s2617_s7 + $0x160] sm:$0xff] %vm1216_vm1, %v1187_v33 }
 0x108   : > { %1262 = vst.msk [vmem:[%s2617_s7 + $0x168] sm:$0xff] %vm1216_vm1, %v1187_v33  ;;  %v1141_v34 = vpop.f32.mrf.mxu1 }
 0x109   : > { %v1189_v54 = vpop.f32.mrf.mxu3 }
 0x10a   : > { %v932_v49 = vpop.f32.mrf.mxu0 }
 0x10b   : > { %v980_v18 = vpop.f32.mrf.mxu2  ;;  %v1142_v15 = vadd.f32 %v1141_v34, %v932_v49 }
 0x10c   : > { %v1190_v56 = vadd.f32 %v1189_v54, %v980_v18 }
 0x10d   : > { %1231 = vst.msk [vmem:[%s2617_s7 + $0x70] sm:$0xff] %vm1216_vm1, %v1142_v15 }
 0x10e   : > { %1232 = vst.msk [vmem:[%s2617_s7 + $0x78] sm:$0xff] %vm1216_vm1, %v1142_v15 }
 0x10f   : > { %1263 = vst.msk [vmem:[%s2617_s7 + $0x170] sm:$0xff] %vm1216_vm1, %v1190_v56 }
 0x110   : > { %1264 = vst.msk [vmem:[%s2617_s7 + $0x178] sm:$0xff] %vm1216_vm1, %v1190_v56  ;;  %v1144_v35 = vpop.f32.mrf.mxu1 }
 0x111   : > { %v1192_v41 = vpop.f32.mrf.mxu3 }
 0x112   : > { %v935_v38 = vpop.f32.mrf.mxu0 }
 0x113   : > { %v983_v13 = vpop.f32.mrf.mxu2  ;;  %v1145_v39 = vadd.f32 %v1144_v35, %v935_v38 }
 0x114   : > { %v1193_v1 = vadd.f32 %v1192_v41, %v983_v13 }
 0x115   : > { %1233 = vst.msk [vmem:[%s2617_s7 + $0x80] sm:$0xff] %vm1216_vm1, %v1145_v39 }
 0x116   : > { %1234 = vst.msk [vmem:[%s2617_s7 + $0x88] sm:$0xff] %vm1216_vm1, %v1145_v39 }
 0x117   : > { %1265 = vst.msk [vmem:[%s2617_s7 + $0x180] sm:$0xff] %vm1216_vm1, %v1193_v1 }
 0x118   : > { %1266 = vst.msk [vmem:[%s2617_s7 + $0x188] sm:$0xff] %vm1216_vm1, %v1193_v1  ;;  %v1147_v32 = vpop.f32.mrf.mxu1 }
 0x119   : > { %v1195_v62 = vpop.f32.mrf.mxu3 }
 0x11a   : > { %v938_v12 = vpop.f32.mrf.mxu0 }
 0x11b   : > { %v986_v3 = vpop.f32.mrf.mxu2  ;;  %v1148_v4 = vadd.f32 %v1147_v32, %v938_v12 }
 0x11c   : > { %v1196_v6 = vadd.f32 %v1195_v62, %v986_v3 }
 0x11d   : > { %1235 = vst.msk [vmem:[%s2617_s7 + $0x90] sm:$0xff] %vm1216_vm1, %v1148_v4 }
 0x11e   : > { %1236 = vst.msk [vmem:[%s2617_s7 + $0x98] sm:$0xff] %vm1216_vm1, %v1148_v4 }
 0x11f   : > { %1267 = vst.msk [vmem:[%s2617_s7 + $0x190] sm:$0xff] %vm1216_vm1, %v1196_v6 }
 0x120   : > { %1268 = vst.msk [vmem:[%s2617_s7 + $0x198] sm:$0xff] %vm1216_vm1, %v1196_v6  ;;  %v1150_v28 = vpop.f32.mrf.mxu1 }
 0x121   : > { %v1198_v14 = vpop.f32.mrf.mxu3 }
 0x122   : > { %v941_v10 = vpop.f32.mrf.mxu0 }
 0x123   : > { %v989_v22 = vpop.f32.mrf.mxu2  ;;  %v1151_v30 = vadd.f32 %v1150_v28, %v941_v10 }
 0x124   : > { %v1199_v46 = vadd.f32 %v1198_v14, %v989_v22 }
 0x125   : > { %1237 = vst.msk [vmem:[%s2617_s7 + $0xa0] sm:$0xff] %vm1216_vm1, %v1151_v30 }
 0x126   : > { %1238 = vst.msk [vmem:[%s2617_s7 + $0xa8] sm:$0xff] %vm1216_vm1, %v1151_v30 }
 0x127   : > { %1269 = vst.msk [vmem:[%s2617_s7 + $0x1a0] sm:$0xff] %vm1216_vm1, %v1199_v46 }
 0x128   : > { %1270 = vst.msk [vmem:[%s2617_s7 + $0x1a8] sm:$0xff] %vm1216_vm1, %v1199_v46  ;;  %v1153_v7 = vpop.f32.mrf.mxu1 }
 0x129   : > { %v1201_v8 = vpop.f32.mrf.mxu3 }
 0x12a   : > { %v944_v63 = vpop.f32.mrf.mxu0 }
 0x12b   : > { %v992_v53 = vpop.f32.mrf.mxu2  ;;  %v1154_v20 = vadd.f32 %v1153_v7, %v944_v63 }
 0x12c   : > { %v1202_v27 = vadd.f32 %v1201_v8, %v992_v53 }
 0x12d   : > { %1239 = vst.msk [vmem:[%s2617_s7 + $0xb0] sm:$0xff] %vm1216_vm1, %v1154_v20 }
 0x12e   : > { %1240 = vst.msk [vmem:[%s2617_s7 + $0xb8] sm:$0xff] %vm1216_vm1, %v1154_v20 }
 0x12f   : > { %1271 = vst.msk [vmem:[%s2617_s7 + $0x1b0] sm:$0xff] %vm1216_vm1, %v1202_v27 }
 0x130   : > { %1272 = vst.msk [vmem:[%s2617_s7 + $0x1b8] sm:$0xff] %vm1216_vm1, %v1202_v27  ;;  %v1156_v11 = vpop.f32.mrf.mxu1 }
 0x131   : > { %v1204_v16 = vpop.f32.mrf.mxu3 }
 0x132   : > { %v947_v19 = vpop.f32.mrf.mxu0 }
 0x133   : > { %v995_v29 = vpop.f32.mrf.mxu2  ;;  %v1157_v52 = vadd.f32 %v1156_v11, %v947_v19 }
 0x134   : > { %v1205_v0 = vadd.f32 %v1204_v16, %v995_v29 }
 0x135   : > { %1241 = vst.msk [vmem:[%s2617_s7 + $0xc0] sm:$0xff] %vm1216_vm1, %v1157_v52 }
 0x136   : > { %1242 = vst.msk [vmem:[%s2617_s7 + $0xc8] sm:$0xff] %vm1216_vm1, %v1157_v52 }
 0x137   : > { %1273 = vst.msk [vmem:[%s2617_s7 + $0x1c0] sm:$0xff] %vm1216_vm1, %v1205_v0 }
 0x138   : > { %1274 = vst.msk [vmem:[%s2617_s7 + $0x1c8] sm:$0xff] %vm1216_vm1, %v1205_v0  ;;  %v1159_v24 = vpop.f32.mrf.mxu1 }
 0x139   : > { %v1207_v58 = vpop.f32.mrf.mxu3 }
 0x13a   : > { %v950_v59 = vpop.f32.mrf.mxu0 }
 0x13b   : > { %v998_v50 = vpop.f32.mrf.mxu2  ;;  %v1160_v44 = vadd.f32 %v1159_v24, %v950_v59 }
 0x13c   : > { %v1208_v55 = vadd.f32 %v1207_v58, %v998_v50 }
 0x13d   : > { %1243 = vst.msk [vmem:[%s2617_s7 + $0xd0] sm:$0xff] %vm1216_vm1, %v1160_v44 }
 0x13e   : > { %1244 = vst.msk [vmem:[%s2617_s7 + $0xd8] sm:$0xff] %vm1216_vm1, %v1160_v44 }
 0x13f   : > { %1275 = vst.msk [vmem:[%s2617_s7 + $0x1d0] sm:$0xff] %vm1216_vm1, %v1208_v55 }
 0x140   : > { %1276 = vst.msk [vmem:[%s2617_s7 + $0x1d8] sm:$0xff] %vm1216_vm1, %v1208_v55  ;;  %v1162_v45 = vpop.f32.mrf.mxu1 }
 0x141   : > { %v1210_v26 = vpop.f32.mrf.mxu3 }
 0x142   : > { %v953_v37 = vpop.f32.mrf.mxu0 }
 0x143   : > { %v1001_v60 = vpop.f32.mrf.mxu2  ;;  %v1163_v57 = vadd.f32 %v1162_v45, %v953_v37 }
 0x144   : > { %v1211_v21 = vadd.f32 %v1210_v26, %v1001_v60 }
 0x145   : > { %1245 = vst.msk [vmem:[%s2617_s7 + $0xe0] sm:$0xff] %vm1216_vm1, %v1163_v57 }
 0x146   : > { %1246 = vst.msk [vmem:[%s2617_s7 + $0xe8] sm:$0xff] %vm1216_vm1, %v1163_v57 }
 0x147   : > { %1277 = vst.msk [vmem:[%s2617_s7 + $0x1e0] sm:$0xff] %vm1216_vm1, %v1211_v21 }
 0x148   : > { %1278 = vst.msk [vmem:[%s2617_s7 + $0x1e8] sm:$0xff] %vm1216_vm1, %v1211_v21  ;;  %v1165_v31 = vpop.f32.mrf.mxu1 }
 0x149   : > { %v1213_v61 = vpop.f32.mrf.mxu3 }
 0x14a   : > { %v956_v43 = vpop.f32.mrf.mxu0 }
 0x14b   : > { %v1004_v2 = vpop.f32.mrf.mxu2  ;;  %v1166_v5 = vadd.f32 %v1165_v31, %v956_v43 }
 0x14c   : > { %v1214_v48 = vadd.f32 %v1213_v61, %v1004_v2 }
 0x14d   : > { %1247 = vst.msk [vmem:[%s2617_s7 + $0xf0] sm:$0xff] %vm1216_vm1, %v1166_v5 }
 0x14e   : > { %1248 = vst.msk [vmem:[%s2617_s7 + $0xf8] sm:$0xff] %vm1216_vm1, %v1166_v5 }
 0x14f   : > { %1279 = vst.msk [vmem:[%s2617_s7 + $0x1f0] sm:$0xff] %vm1216_vm1, %v1214_v48 }
 0x150   : > { %1280 = vst.msk [vmem:[%s2617_s7 + $0x1f8] sm:$0xff] %vm1216_vm1, %v1214_v48 }
 0x151   : > { %1714 = shalt.err (!%p1711_p1)
}
 0x152   : > { %s1783_s22 = smov 128   ;;  %s1784_s10 = smov 8  }
 0x153   : > { %1550 = dma.vmem_to_hbm [thread:$0]  (%p1862_p8), %s1299_s18, 8192, %s1301_s21, %s1282_s25, %s1783_s22, %s1783_s22, %s1784_s10  }
 0x154 PF: > { %s1315_s14 = sand.u32 1, %s1757_s15   ;;  %p1564_p2 = pnand %p1420_p13, %p1866_p9 }
 0x155   : > { %s1316_s30 = scalar_lea.sflag [#allocation5], %s1315_s14 }
 0x156   : > { %p1565_p4 = pneg %p1564_p2 }
 0x158   : > { %1752 = dma.done.wait (%p1565_p4), %s1316_s30, 8192  }
 0x159   : > { %1754 = vsyncadd (%p1565_p4), %s1316_s30, 4294959104  ;;  %s22_s20 = sadd.s32 1, %s1777_s20   ;;  %s2802_s15 = smov %s1761_s16 }
 0x15a   : > { %p19_p6 = scmp.ge.s32.totalorder %s22_s20, 4   ;;  %s2803_s16 = smov %s1765_s17 }
 0x15b   : > { %s2804_s17 = smov %s1907_s9  ;;  %s2805_s18 = smov %s1773_s19 }
 0x15c   : > { %s2806_s19 = smov %s2808_s13  ;;  %21 = sbr.rel (!%p19_p6) target bundleno = 11 (0xb), region = 97 }
 0x161   :  { %1322 = vsyncpa [#allocation4], 1 }
 0x162   :  { %1324 = vsyncpa [#allocation4 + $0x1], 1 }
 0x163   :  { %1325 = vsyncpa [#allocation5], 1 }
 0x164   :  { %1327 = vsyncpa [#allocation5 + $0x1], 1 }
 0x165   :  { %1328 = vsyncpa [#allocation6], 1 }
 0x166   :  { %1330 = vsyncpa [#allocation6 + $0x1], 1 }
 0x167   :  { %1331 = vsyncpa [#allocation9], 1 }

</bundles_post_ra>
